<compile_context>
chip_gen: v7x
topology: tpu7x:2x2x1
jax: 0.10.0
libtpu: 0.0.40
codegen_flags: <defaults>
</compile_context>

<pallas_src>
import functools

import numpy as np
import jax
import jax.numpy as jnp
from jax.experimental import pallas as pl
from jax.experimental.pallas import tpu as pltpu

BN_EPS = 1e-5
_LANE_TILE = 512                    # lane (pixel) tile, cdiv-gridded
_VMEM_LIMIT = 32 * 1024 * 1024      # explicit per-step VMEM budget


# ----------------------------------------------------------------------------
# Pallas kernels (rows = channels / K taps in sublanes, pixels in lanes)
# ----------------------------------------------------------------------------
def _dense_kernel(relu, x_ref, w_ref, shift_ref, o_ref):
    """out = [relu](W @ X + shift); W is BN-scale folded, shift holds bias+BN."""
    y = jnp.dot(w_ref[...], x_ref[...], preferred_element_type=jnp.float32)
    y = y + shift_ref[...]
    if relu:
        y = jnp.maximum(y, 0.0)
    o_ref[...] = y


def _dense_res_kernel(x_ref, w_ref, res_ref, scale_ref, shift_ref, o_ref):
    """out = relu(W @ X + scale*res + shift)   (residual added before BN)."""
    y = jnp.dot(w_ref[...], x_ref[...], preferred_element_type=jnp.float32)
    y = y + scale_ref[...] * res_ref[...] + shift_ref[...]
    o_ref[...] = jnp.maximum(y, 0.0)


def _conv5_conv8_kernel(x_ref, w5_ref, sh5_ref, w8_ref, b8_ref,
                        x2a_ref, res8_ref):
    """Fused conv5 (+BN+ReLU) and conv8 (1x1 conv on conv5's output)."""
    y = jnp.dot(w5_ref[...], x_ref[...], preferred_element_type=jnp.float32)
    y = jnp.maximum(y + sh5_ref[...], 0.0)
    x2a_ref[...] = y
    r = jnp.dot(w8_ref[...], y.astype(jnp.bfloat16),
                preferred_element_type=jnp.float32)
    res8_ref[...] = r + b8_ref[...]


def _spec_kernel(row_stride, k_rows, relu, x_ref, w_ref, shift_ref, o_ref):
    """Fused-im2col 1-D spectral conv: grid axis 1 = output band t; the tap
    window is the contiguous row block [t*row_stride, t*row_stride+k_rows)."""
    t = pl.program_id(1)
    start = pl.multiple_of(t * row_stride, 8)
    xs = x_ref[pl.ds(start, k_rows), :].astype(jnp.bfloat16)
    y = jnp.dot(w_ref[...], xs, preferred_element_type=jnp.float32)
    y = y + shift_ref[...]
    if relu:
        y = jnp.maximum(y, 0.0)
    o_ref[...] = y


def _spec_res_kernel(row_stride, k_rows, x_ref, w_ref, res_ref, scale_ref,
                     shift_ref, o_ref):
    t = pl.program_id(1)
    start = pl.multiple_of(t * row_stride, 8)
    xs = x_ref[pl.ds(start, k_rows), :].astype(jnp.bfloat16)
    y = jnp.dot(w_ref[...], xs, preferred_element_type=jnp.float32)
    y = y + scale_ref[...] * res_ref[...] + shift_ref[...]
    o_ref[...] = jnp.maximum(y, 0.0)


# ----------------------------------------------------------------------------
# pallas_call wrappers
# ----------------------------------------------------------------------------
def _lane_tile(m):
    return m if m <= _LANE_TILE else _LANE_TILE


def dense_affine(x, w, shift, *, relu):
    """(Cout, M) = [relu](W @ X + shift).  x:(K, M) f32, w:(Cout, K) f32."""
    k, m = x.shape
    cout = w.shape[0]
    tm = _lane_tile(m)
    return pl.pallas_call(
        functools.partial(_dense_kernel, relu),
        out_shape=jax.ShapeDtypeStruct((cout, m), jnp.float32),
        grid=(pl.cdiv(m, tm),),
        in_specs=[
            pl.BlockSpec((k, tm), lambda i: (0, i)),
            pl.BlockSpec((cout, k), lambda i: (0, 0)),
            pl.BlockSpec((cout, 1), lambda i: (0, 0)),
        ],
        out_specs=pl.BlockSpec((cout, tm), lambda i: (0, i)),
        compiler_params=pltpu.CompilerParams(
            dimension_semantics=("parallel",),
            vmem_limit_bytes=_VMEM_LIMIT),
    )(x.astype(jnp.bfloat16), w.astype(jnp.bfloat16),
      shift.reshape(cout, 1).astype(jnp.float32))


def dense_affine_res(x, w, res, scale, shift):
    k, m = x.shape
    cout = w.shape[0]
    tm = _lane_tile(m)
    return pl.pallas_call(
        _dense_res_kernel,
        out_shape=jax.ShapeDtypeStruct((cout, m), jnp.float32),
        grid=(pl.cdiv(m, tm),),
        in_specs=[
            pl.BlockSpec((k, tm), lambda i: (0, i)),
            pl.BlockSpec((cout, k), lambda i: (0, 0)),
            pl.BlockSpec((cout, tm), lambda i: (0, i)),
            pl.BlockSpec((cout, 1), lambda i: (0, 0)),
            pl.BlockSpec((cout, 1), lambda i: (0, 0)),
        ],
        out_specs=pl.BlockSpec((cout, tm), lambda i: (0, i)),
        compiler_params=pltpu.CompilerParams(
            dimension_semantics=("parallel",),
            vmem_limit_bytes=_VMEM_LIMIT),
    )(x.astype(jnp.bfloat16), w.astype(jnp.bfloat16), res.astype(jnp.float32),
      scale.reshape(cout, 1).astype(jnp.float32),
      shift.reshape(cout, 1).astype(jnp.float32))


def conv5_conv8_fused(x, w5, sh5, w8, b8):
    """x:(D, M) -> (x2a:(24, M), res8:(24, M)) in one pallas_call."""
    k, m = x.shape
    cout = w5.shape[0]
    tm = _lane_tile(m)
    return pl.pallas_call(
        _conv5_conv8_kernel,
        out_shape=(jax.ShapeDtypeStruct((cout, m), jnp.float32),
                   jax.ShapeDtypeStruct((cout, m), jnp.float32)),
        grid=(pl.cdiv(m, tm),),
        in_specs=[
            pl.BlockSpec((k, tm), lambda i: (0, i)),
            pl.BlockSpec((cout, k), lambda i: (0, 0)),
            pl.BlockSpec((cout, 1), lambda i: (0, 0)),
            pl.BlockSpec((cout, cout), lambda i: (0, 0)),
            pl.BlockSpec((cout, 1), lambda i: (0, 0)),
        ],
        out_specs=[pl.BlockSpec((cout, tm), lambda i: (0, i)),
                   pl.BlockSpec((cout, tm), lambda i: (0, i))],
        compiler_params=pltpu.CompilerParams(
            dimension_semantics=("parallel",),
            vmem_limit_bytes=_VMEM_LIMIT),
    )(x.astype(jnp.bfloat16), w5.astype(jnp.bfloat16),
      sh5.reshape(cout, 1).astype(jnp.float32), w8.astype(jnp.bfloat16),
      b8.reshape(cout, 1).astype(jnp.float32))


def spectral_conv(xrows, w, shift, *, d_out, row_stride, res=None, scale=None,
                  relu=True):
    """Fused-im2col spectral conv in the (band, channel)-interleaved layout.

    xrows : (R, M) f32 rows ordered (band, channel); output band t reads rows
            [t*row_stride, t*row_stride + K).
    w     : (Cout, K) f32 (BN scale already folded).
    out   : (d_out*Cout, M) f32, rows ordered (band, channel).
    """
    rin, m = xrows.shape
    cout, k_rows = w.shape
    tm = _lane_tile(m)
    grid = (pl.cdiv(m, tm), d_out)          # pixel tiles outer, bands inner
    cp = pltpu.CompilerParams(dimension_semantics=("parallel", "arbitrary"),
                              vmem_limit_bytes=_VMEM_LIMIT)
    out_shape = jax.ShapeDtypeStruct((d_out * cout, m), jnp.float32)
    w_bf = w.astype(jnp.bfloat16)
    shift2 = shift.reshape(cout, 1).astype(jnp.float32)
    if res is None:
        return pl.pallas_call(
            functools.partial(_spec_kernel, row_stride, k_rows, relu),
            out_shape=out_shape,
            grid=grid,
            in_specs=[
                pl.BlockSpec((rin, tm), lambda i, t: (0, i)),
                pl.BlockSpec((cout, k_rows), lambda i, t: (0, 0)),
                pl.BlockSpec((cout, 1), lambda i, t: (0, 0)),
            ],
            out_specs=pl.BlockSpec((cout, tm), lambda i, t: (t, i)),
            compiler_params=cp,
        )(xrows, w_bf, shift2)
    return pl.pallas_call(
        functools.partial(_spec_res_kernel, row_stride, k_rows),
        out_shape=out_shape,
        grid=grid,
        in_specs=[
            pl.BlockSpec((rin, tm), lambda i, t: (0, i)),
            pl.BlockSpec((cout, k_rows), lambda i, t: (0, 0)),
            pl.BlockSpec((cout, tm), lambda i, t: (t, i)),
            pl.BlockSpec((cout, 1), lambda i, t: (0, 0)),
            pl.BlockSpec((cout, 1), lambda i, t: (0, 0)),
        ],
        out_specs=pl.BlockSpec((cout, tm), lambda i, t: (t, i)),
        compiler_params=cp,
    )(xrows, w_bf, res.astype(jnp.float32),
      scale.reshape(cout, 1).astype(jnp.float32), shift2)


# ----------------------------------------------------------------------------
# DCRN forward (inference) wired from the kernels above
# ----------------------------------------------------------------------------
def dcrn_forward(params, x):
    """x: (N, 1, D, H, W) with D = spectral bands, H = W = patch_size."""
    n, _, d, h, w_sp = x.shape
    m = n * h * w_sp
    d1 = (d - 7) // 2 + 1           # conv1: kernel 7, stride 2, no padding
    c = 24

    # TODO(synk): BatchNorm implemented in eval mode (folded running stats);
    # training-mode batch statistics are not computed.
    def fold(conv, bn):
        s = bn['gamma'] / jnp.sqrt(bn['var'] + BN_EPS)
        shift = s * (conv['b'] - bn['mean']) + bn['beta']
        return s, shift

    def scale_w(wmat, s):
        return s[:, None] * wmat

    # raw input in spectral-rows / pixel-lanes layout: (D, M), M ordered (n,h,w)
    xspec = jnp.transpose(x[:, 0], (1, 0, 2, 3)).reshape(d, m)

    # ---- branch 1 : spectral residual stack (conv1..conv4) -----------------
    s1, sh1 = fold(params['conv1'], params['bn1'])
    w1 = params['conv1']['w'].reshape(c, 7)
    w1 = jnp.concatenate([w1, jnp.zeros((c, 1), w1.dtype)], axis=1)   # pad tap->8
    # gathered (d1, 7, M) windows + zero tap -> (d1*8, M), 8-aligned row blocks
    win_idx = 2 * jnp.arange(d1)[:, None] + jnp.arange(7)[None, :]
    xwin = xspec[win_idx]                                             # (d1, 7, M)
    xcol1 = jnp.concatenate(
        [xwin, jnp.zeros((d1, 1, m), xspec.dtype)], axis=1).reshape(d1 * 8, m)
    a1 = spectral_conv(xcol1, scale_w(w1, s1), sh1, d_out=d1, row_stride=8)

    def edge_pad_bands(a):
        # replicate padding (padding_mode='replicate') of the band axis by 3
        a3 = a.reshape(d1, c, m)
        a3 = jnp.pad(a3, ((3, 3), (0, 0), (0, 0)), mode='edge')
        return a3.reshape((d1 + 6) * c, m)

    def spec_w(wt):
        # (Cout, Cin, 7, 1, 1) -> (Cout, 7*Cin), columns ordered (tap, cin)
        return jnp.transpose(wt[:, :, :, 0, 0], (0, 2, 1)).reshape(c, 7 * c)

    s2, sh2 = fold(params['conv2'], params['bn2'])
    a2 = spectral_conv(edge_pad_bands(a1),
                       scale_w(spec_w(params['conv2']['w']), s2), sh2,
                       d_out=d1, row_stride=c)

    s3, sh3 = fold(params['conv3'], params['bn3'])
    a3 = spectral_conv(edge_pad_bands(a2),
                       scale_w(spec_w(params['conv3']['w']), s3), sh3,
                       d_out=d1, row_stride=c, res=a1, scale=s3)

    # conv4: full (band, channel) contraction -> 128 channels
    s4, sh4 = fold(params['conv4'], params['bn4'])
    w4 = jnp.transpose(params['conv4']['w'][:, :, :, 0, 0],
                       (0, 2, 1)).reshape(128, d1 * c)
    x1o = dense_affine(a3, scale_w(w4, s4), sh4, relu=True)           # (128, M)

    # ---- branch 2 : spatial residual stack (conv5..conv8) ------------------
    s5, sh5 = fold(params['conv5'], params['bn5'])
    w5 = params['conv5']['w'].reshape(c, d)
    w8 = params['conv8']['w'].reshape(c, c)
    # conv5 (+BN+ReLU) and conv8 (1x1 on conv5's output) fused in one call
    x2a, res8 = conv5_conv8_fused(xspec, scale_w(w5, s5), sh5,
                                  w8, params['conv8']['b'])           # (24, M) x2

    # TODO(synk): 3x3 spatial taps are built host-side (K=216 in sublanes);
    # they could be generated in-kernel with lane rolls for a further HBM cut.
    def unfold3x3(a):
        a4 = a.reshape(c, n, h, w_sp)
        ap = jnp.pad(a4, ((0, 0), (0, 0), (1, 1), (1, 1)), mode='edge')
        taps = [ap[:, :, i:i + h, j:j + w_sp] for i in range(3) for j in range(3)]
        return jnp.stack(taps, axis=1).reshape(c * 9, m)

    s6, sh6 = fold(params['conv6'], params['bn6'])
    w6 = params['conv6']['w'].reshape(c, c * 9)
    x2b = dense_affine(unfold3x3(x2a), scale_w(w6, s6), sh6, relu=True)

    s7, sh7 = fold(params['conv7'], params['bn7'])
    w7 = params['conv7']['w'].reshape(c, c * 9)
    x2c = dense_affine_res(unfold3x3(x2b), scale_w(w7, s7), res8, s7, sh7)

    # ---- head : concat, spatial average pool, fc ----------------------------
    xcat = jnp.concatenate([x1o, x2c], axis=0)                        # (152, M)
    pooled = xcat.reshape(xcat.shape[0], n, h * w_sp).mean(axis=2)    # (152, N)
    logits = dense_affine(pooled, params['fc']['w'], params['fc']['b'],
                          relu=False)                                 # (cls, N)
    return jnp.transpose(logits)                                      # (N, cls)


# ----------------------------------------------------------------------------
# Deterministic parameter init + pure-JAX reference for verification
# ----------------------------------------------------------------------------
def _conv_p(key, cout, cin, ksize):
    kw, kb = jax.random.split(key)
    fan_in = cin * int(np.prod(ksize))
    return dict(
        w=jax.random.normal(kw, (cout, cin) + ksize, jnp.float32) / np.sqrt(fan_in),
        b=0.05 * jax.random.normal(kb, (cout,), jnp.float32))


def _bn_p(key, cch):
    kg, kb, km, kv = jax.random.split(key, 4)
    return dict(
        gamma=1.0 + 0.1 * jax.random.normal(kg, (cch,), jnp.float32),
        beta=0.1 * jax.random.normal(kb, (cch,), jnp.float32),
        mean=0.1 * jax.random.normal(km, (cch,), jnp.float32),
        var=jax.random.uniform(kv, (cch,), jnp.float32, minval=0.5, maxval=1.5))


def init_params(key, d, n_classes):
    d1 = (d - 7) // 2 + 1
    ks = jax.random.split(key, 17)
    return dict(
        conv1=_conv_p(ks[0], 24, 1, (7, 1, 1)),   bn1=_bn_p(ks[1], 24),
        conv2=_conv_p(ks[2], 24, 24, (7, 1, 1)),  bn2=_bn_p(ks[3], 24),
        conv3=_conv_p(ks[4], 24, 24, (7, 1, 1)),  bn3=_bn_p(ks[5], 24),
        conv4=_conv_p(ks[6], 128, 24, (d1, 1, 1)), bn4=_bn_p(ks[7], 128),
        conv5=_conv_p(ks[8], 24, 1, (d, 1, 1)),   bn5=_bn_p(ks[9], 24),
        conv6=_conv_p(ks[10], 24, 24, (1, 3, 3)), bn6=_bn_p(ks[11], 24),
        conv7=_conv_p(ks[12], 24, 24, (1, 3, 3)), bn7=_bn_p(ks[13], 24),
        conv8=_conv_p(ks[14], 24, 24, (1, 1, 1)),
        fc=dict(
            w=jax.random.normal(ks[15], (n_classes, 152), jnp.float32) / np.sqrt(152.0),
            b=0.05 * jax.random.normal(ks[16], (n_classes,), jnp.float32)),
    )


def _conv3d_ref(x, w, b, stride=(1, 1, 1), pad=(0, 0, 0), mode='constant'):
    if any(pad):
        pm = 'edge' if mode == 'replicate' else 'constant'
        x = jnp.pad(x, ((0, 0), (0, 0), (pad[0],) * 2, (pad[1],) * 2, (pad[2],) * 2),
                    mode=pm)
    y = jax.lax.conv_general_dilated(
        x, w, window_strides=stride, padding='VALID',
        dimension_numbers=('NCDHW', 'OIDHW', 'NCDHW'),
        precision=jax.lax.Precision.HIGHEST)
    return y + b.reshape(1, -1, 1, 1, 1)


def _bn_ref(x, p):
    s = p['gamma'] / jnp.sqrt(p['var'] + BN_EPS)
    t = p['beta'] - p['mean'] * s
    return x * s.reshape(1, -1, 1, 1, 1) + t.reshape(1, -1, 1, 1, 1)


def dcrn_ref(params, x):
    relu = lambda v: jnp.maximum(v, 0.0)
    n, _, _, h, w_sp = x.shape

    x1 = _conv3d_ref(x, params['conv1']['w'], params['conv1']['b'], stride=(2, 1, 1))
    x1 = relu(_bn_ref(x1, params['bn1']))
    res = x1
    x1 = relu(_bn_ref(_conv3d_ref(x1, params['conv2']['w'], params['conv2']['b'],
                                  pad=(3, 0, 0), mode='replicate'), params['bn2']))
    x1 = _conv3d_ref(x1, params['conv3']['w'], params['conv3']['b'],
                     pad=(3, 0, 0), mode='replicate')
    x1 = relu(_bn_ref(res + x1, params['bn3']))
    x1 = relu(_bn_ref(_conv3d_ref(x1, params['conv4']['w'], params['conv4']['b']),
                      params['bn4']))
    x1 = x1.reshape(n, 128, h, w_sp)

    x2 = relu(_bn_ref(_conv3d_ref(x, params['conv5']['w'], params['conv5']['b']),
                      params['bn5']))
    res2 = _conv3d_ref(x2, params['conv8']['w'], params['conv8']['b'])
    x2 = relu(_bn_ref(_conv3d_ref(x2, params['conv6']['w'], params['conv6']['b'],
                                  pad=(0, 1, 1), mode='replicate'), params['bn6']))
    x2 = _conv3d_ref(x2, params['conv7']['w'], params['conv7']['b'],
                     pad=(0, 1, 1), mode='replicate')
    x2 = relu(_bn_ref(res2 + x2, params['bn7']))
    x2 = x2.reshape(n, 24, h, w_sp)

    xc = jnp.concatenate([x1, x2], axis=1)
    pooled = xc.mean(axis=(2, 3))                   # AvgPool3d((1, sz, sz))
    return pooled @ params['fc']['w'].T + params['fc']['b']


if __name__ == "__main__":
    # Small shapes consistent with the module: 16 spectral bands, 5x5 patch.
    # NOTE: conv9/conv10/bn9/bn10 exist in __init__ but are unused in forward.
    N, BANDS, SZ, CLASSES = 2, 16, 5, 4

    key = jax.random.PRNGKey(0)
    kx, kp = jax.random.split(key)
    x = jax.random.normal(kx, (N, 1, BANDS, SZ, SZ), jnp.float32)
    params = init_params(kp, BANDS, CLASSES)

    out = jax.jit(dcrn_forward)(params, x)
    out = jax.block_until_ready(out)

    ref = np.asarray(dcrn_ref(params, x))
    assert out.shape == (N, CLASSES), out.shape
    # bf16 matmuls with f32 accumulation vs an f32 HIGHEST-precision reference
    np.testing.assert_allclose(np.asarray(out), ref, rtol=5e-2, atol=5e-2)
    print("KERNEL_OK")
</pallas_src>

<mosaic_0001>
module attributes {stable_mosaic.version = 11 : i64} {
  func.func @_conv5_conv8_kernel(%arg0: i32, %arg1: memref<16x50xbf16, #tpu.memory_space<vmem>>, %arg2: memref<24x16xbf16, #tpu.memory_space<vmem>>, %arg3: memref<24x1xf32, #tpu.memory_space<vmem>>, %arg4: memref<24x24xbf16, #tpu.memory_space<vmem>>, %arg5: memref<24x1xf32, #tpu.memory_space<vmem>>, %arg6: memref<24x50xf32, #tpu.memory_space<vmem>>, %arg7: memref<24x50xf32, #tpu.memory_space<vmem>>) attributes {dimension_semantics = [#tpu.dimension_semantics<parallel>], iteration_bounds = array<i64: 1>, scalar_prefetch = 0 : i64, scratch_operands = 0 : i64, tpu.core_type = #tpu.core_type<tc>, window_params = [{transform_indices = @transform_0, window_bounds = array<i64: 16, 50>}, {pipeline_mode = #tpu.pipeline_mode<synchronous>, transform_indices = @transform_1, window_bounds = array<i64: 24, 16>}, {pipeline_mode = #tpu.pipeline_mode<synchronous>, transform_indices = @transform_2, window_bounds = array<i64: 24, 1>}, {pipeline_mode = #tpu.pipeline_mode<synchronous>, transform_indices = @transform_3, window_bounds = array<i64: 24, 24>}, {pipeline_mode = #tpu.pipeline_mode<synchronous>, transform_indices = @transform_4, window_bounds = array<i64: 24, 1>}, {transform_indices = @transform_5, window_bounds = array<i64: 24, 50>}, {transform_indices = @transform_6, window_bounds = array<i64: 24, 50>}]} {
    %c0 = arith.constant 0 : index
    %c0_0 = arith.constant 0 : index
    %0 = vector.load %arg2[%c0, %c0_0] : memref<24x16xbf16, #tpu.memory_space<vmem>>, vector<24x16xbf16>
    %c0_1 = arith.constant 0 : index
    %c0_2 = arith.constant 0 : index
    %1 = vector.load %arg1[%c0_1, %c0_2] : memref<16x50xbf16, #tpu.memory_space<vmem>>, vector<16x50xbf16>
    %cst = arith.constant dense<0.000000e+00> : vector<24x50xf32>
    %2 = tpu.matmul %0, %1, %cst {dimension_numbers = #tpu.dot_dimension_numbers<[1], [0], [0], [1], [0, 0, 1, 1], [], []>} : vector<24x16xbf16>, vector<16x50xbf16>, vector<24x50xf32> -> vector<24x50xf32>
    %c0_3 = arith.constant 0 : index
    %c0_4 = arith.constant 0 : index
    %3 = vector.load %arg3[%c0_3, %c0_4] : memref<24x1xf32, #tpu.memory_space<vmem>>, vector<24x1xf32>
    %4 = vector.broadcast %3 : vector<24x1xf32> to vector<24x50xf32>
    %5 = arith.addf %2, %4 : vector<24x50xf32>
    %cst_5 = arith.constant 0.000000e+00 : f32
    %6 = vector.broadcast %cst_5 : f32 to vector<24x50xf32>
    %7 = arith.maximumf %5, %6 : vector<24x50xf32>
    %c0_6 = arith.constant 0 : index
    %c0_7 = arith.constant 0 : index
    %8 = vector.load %arg6[%c0_6, %c0_7] : memref<24x50xf32, #tpu.memory_space<vmem>>, vector<24x50xf32>
    tpu.vector_store %arg6[%c0_6, %c0_7], %7 {strides = array<i32>} : memref<24x50xf32, #tpu.memory_space<vmem>>, vector<24x50xf32>,
    %c0_8 = arith.constant 0 : index
    %c0_9 = arith.constant 0 : index
    %9 = vector.load %arg4[%c0_8, %c0_9] : memref<24x24xbf16, #tpu.memory_space<vmem>>, vector<24x24xbf16>
    %10 = arith.truncf %7 : vector<24x50xf32> to vector<24x50xbf16>
    %cst_10 = arith.constant dense<0.000000e+00> : vector<24x50xf32>
    %11 = tpu.matmul %9, %10, %cst_10 {dimension_numbers = #tpu.dot_dimension_numbers<[1], [0], [0], [1], [0, 0, 1, 1], [], []>} : vector<24x24xbf16>, vector<24x50xbf16>, vector<24x50xf32> -> vector<24x50xf32>
    %c0_11 = arith.constant 0 : index
    %c0_12 = arith.constant 0 : index
    %12 = vector.load %arg5[%c0_11, %c0_12] : memref<24x1xf32, #tpu.memory_space<vmem>>, vector<24x1xf32>
    %13 = vector.broadcast %12 : vector<24x1xf32> to vector<24x50xf32>
    %14 = arith.addf %11, %13 : vector<24x50xf32>
    %c0_13 = arith.constant 0 : index
    %c0_14 = arith.constant 0 : index
    %15 = vector.load %arg7[%c0_13, %c0_14] : memref<24x50xf32, #tpu.memory_space<vmem>>, vector<24x50xf32>
    tpu.vector_store %arg7[%c0_13, %c0_14], %14 {strides = array<i32>} : memref<24x50xf32, #tpu.memory_space<vmem>>, vector<24x50xf32>,
    return
  }
  func.func @transform_0(%arg0: i32) -> (i32, i32) {
    %c0_i32 = arith.constant 0 : i32
    %c0_i32_0 = arith.constant 0 : i32
    return %c0_i32, %arg0 : i32, i32
  }
  func.func @transform_1(%arg0: i32) -> (i32, i32) {
    %c0_i32 = arith.constant 0 : i32
    %c0_i32_0 = arith.constant 0 : i32
    %c0_i32_1 = arith.constant 0 : i32
    return %c0_i32, %c0_i32_0 : i32, i32
  }
  func.func @transform_2(%arg0: i32) -> (i32, i32) {
    %c0_i32 = arith.constant 0 : i32
    %c0_i32_0 = arith.constant 0 : i32
    %c0_i32_1 = arith.constant 0 : i32
    return %c0_i32, %c0_i32_0 : i32, i32
  }
  func.func @transform_3(%arg0: i32) -> (i32, i32) {
    %c0_i32 = arith.constant 0 : i32
    %c0_i32_0 = arith.constant 0 : i32
    %c0_i32_1 = arith.constant 0 : i32
    return %c0_i32, %c0_i32_0 : i32, i32
  }
  func.func @transform_4(%arg0: i32) -> (i32, i32) {
    %c0_i32 = arith.constant 0 : i32
    %c0_i32_0 = arith.constant 0 : i32
    %c0_i32_1 = arith.constant 0 : i32
    return %c0_i32, %c0_i32_0 : i32, i32
  }
  func.func @transform_5(%arg0: i32) -> (i32, i32) {
    %c0_i32 = arith.constant 0 : i32
    %c0_i32_0 = arith.constant 0 : i32
    return %c0_i32, %arg0 : i32, i32
  }
  func.func @transform_6(%arg0: i32) -> (i32, i32) {
    %c0_i32 = arith.constant 0 : i32
    %c0_i32_0 = arith.constant 0 : i32
    return %c0_i32, %arg0 : i32, i32
  }
}

module attributes {stable_mosaic.version = 11 : i64} {
  func.func @_dense_kernel(%arg0: i32, %arg1: memref<216x50xbf16, #tpu.memory_space<vmem>>, %arg2: memref<24x216xbf16, #tpu.memory_space<vmem>>, %arg3: memref<24x1xf32, #tpu.memory_space<vmem>>, %arg4: memref<24x50xf32, #tpu.memory_space<vmem>>) attributes {dimension_semantics = [#tpu.dimension_semantics<parallel>], iteration_bounds = array<i64: 1>, scalar_prefetch = 0 : i64, scratch_operands = 0 : i64, tpu.core_type = #tpu.core_type<tc>, window_params = [{transform_indices = @transform_0, window_bounds = array<i64: 216, 50>}, {pipeline_mode = #tpu.pipeline_mode<synchronous>, transform_indices = @transform_1, window_bounds = array<i64: 24, 216>}, {pipeline_mode = #tpu.pipeline_mode<synchronous>, transform_indices = @transform_2, window_bounds = array<i64: 24, 1>}, {transform_indices = @transform_3, window_bounds = array<i64: 24, 50>}]} {
    %c0 = arith.constant 0 : index
    %c0_0 = arith.constant 0 : index
    %0 = vector.load %arg2[%c0, %c0_0] : memref<24x216xbf16, #tpu.memory_space<vmem>>, vector<24x216xbf16>
    %c0_1 = arith.constant 0 : index
    %c0_2 = arith.constant 0 : index
    %1 = vector.load %arg1[%c0_1, %c0_2] : memref<216x50xbf16, #tpu.memory_space<vmem>>, vector<216x50xbf16>
    %cst = arith.constant dense<0.000000e+00> : vector<24x50xf32>
    %2 = tpu.matmul %0, %1, %cst {dimension_numbers = #tpu.dot_dimension_numbers<[1], [0], [0], [1], [0, 0, 1, 1], [], []>} : vector<24x216xbf16>, vector<216x50xbf16>, vector<24x50xf32> -> vector<24x50xf32>
    %c0_3 = arith.constant 0 : index
    %c0_4 = arith.constant 0 : index
    %3 = vector.load %arg3[%c0_3, %c0_4] : memref<24x1xf32, #tpu.memory_space<vmem>>, vector<24x1xf32>
    %4 = vector.broadcast %3 : vector<24x1xf32> to vector<24x50xf32>
    %5 = arith.addf %2, %4 : vector<24x50xf32>
    %cst_5 = arith.constant 0.000000e+00 : f32
    %6 = vector.broadcast %cst_5 : f32 to vector<24x50xf32>
    %7 = arith.maximumf %5, %6 : vector<24x50xf32>
    %c0_6 = arith.constant 0 : index
    %c0_7 = arith.constant 0 : index
    %8 = vector.load %arg4[%c0_6, %c0_7] : memref<24x50xf32, #tpu.memory_space<vmem>>, vector<24x50xf32>
    tpu.vector_store %arg4[%c0_6, %c0_7], %7 {strides = array<i32>} : memref<24x50xf32, #tpu.memory_space<vmem>>, vector<24x50xf32>,
    return
  }
  func.func @transform_0(%arg0: i32) -> (i32, i32) {
    %c0_i32 = arith.constant 0 : i32
    %c0_i32_0 = arith.constant 0 : i32
    return %c0_i32, %arg0 : i32, i32
  }
  func.func @transform_1(%arg0: i32) -> (i32, i32) {
    %c0_i32 = arith.constant 0 : i32
    %c0_i32_0 = arith.constant 0 : i32
    %c0_i32_1 = arith.constant 0 : i32
    return %c0_i32, %c0_i32_0 : i32, i32
  }
  func.func @transform_2(%arg0: i32) -> (i32, i32) {
    %c0_i32 = arith.constant 0 : i32
    %c0_i32_0 = arith.constant 0 : i32
    %c0_i32_1 = arith.constant 0 : i32
    return %c0_i32, %c0_i32_0 : i32, i32
  }
  func.func @transform_3(%arg0: i32) -> (i32, i32) {
    %c0_i32 = arith.constant 0 : i32
    %c0_i32_0 = arith.constant 0 : i32
    return %c0_i32, %arg0 : i32, i32
  }
}

module attributes {stable_mosaic.version = 11 : i64} {
  func.func @_dense_res_kernel(%arg0: i32, %arg1: memref<216x50xbf16, #tpu.memory_space<vmem>>, %arg2: memref<24x216xbf16, #tpu.memory_space<vmem>>, %arg3: memref<24x50xf32, #tpu.memory_space<vmem>>, %arg4: memref<24x1xf32, #tpu.memory_space<vmem>>, %arg5: memref<24x1xf32, #tpu.memory_space<vmem>>, %arg6: memref<24x50xf32, #tpu.memory_space<vmem>>) attributes {dimension_semantics = [#tpu.dimension_semantics<parallel>], iteration_bounds = array<i64: 1>, scalar_prefetch = 0 : i64, scratch_operands = 0 : i64, tpu.core_type = #tpu.core_type<tc>, window_params = [{transform_indices = @transform_0, window_bounds = array<i64: 216, 50>}, {pipeline_mode = #tpu.pipeline_mode<synchronous>, transform_indices = @transform_1, window_bounds = array<i64: 24, 216>}, {transform_indices = @transform_2, window_bounds = array<i64: 24, 50>}, {pipeline_mode = #tpu.pipeline_mode<synchronous>, transform_indices = @transform_3, window_bounds = array<i64: 24, 1>}, {pipeline_mode = #tpu.pipeline_mode<synchronous>, transform_indices = @transform_4, window_bounds = array<i64: 24, 1>}, {transform_indices = @transform_5, window_bounds = array<i64: 24, 50>}]} {
    %c0 = arith.constant 0 : index
    %c0_0 = arith.constant 0 : index
    %0 = vector.load %arg2[%c0, %c0_0] : memref<24x216xbf16, #tpu.memory_space<vmem>>, vector<24x216xbf16>
    %c0_1 = arith.constant 0 : index
    %c0_2 = arith.constant 0 : index
    %1 = vector.load %arg1[%c0_1, %c0_2] : memref<216x50xbf16, #tpu.memory_space<vmem>>, vector<216x50xbf16>
    %cst = arith.constant dense<0.000000e+00> : vector<24x50xf32>
    %2 = tpu.matmul %0, %1, %cst {dimension_numbers = #tpu.dot_dimension_numbers<[1], [0], [0], [1], [0, 0, 1, 1], [], []>} : vector<24x216xbf16>, vector<216x50xbf16>, vector<24x50xf32> -> vector<24x50xf32>
    %c0_3 = arith.constant 0 : index
    %c0_4 = arith.constant 0 : index
    %3 = vector.load %arg4[%c0_3, %c0_4] : memref<24x1xf32, #tpu.memory_space<vmem>>, vector<24x1xf32>
    %c0_5 = arith.constant 0 : index
    %c0_6 = arith.constant 0 : index
    %4 = vector.load %arg3[%c0_5, %c0_6] : memref<24x50xf32, #tpu.memory_space<vmem>>, vector<24x50xf32>
    %5 = vector.broadcast %3 : vector<24x1xf32> to vector<24x50xf32>
    %6 = arith.mulf %5, %4 : vector<24x50xf32>
    %7 = arith.addf %2, %6 : vector<24x50xf32>
    %c0_7 = arith.constant 0 : index
    %c0_8 = arith.constant 0 : index
    %8 = vector.load %arg5[%c0_7, %c0_8] : memref<24x1xf32, #tpu.memory_space<vmem>>, vector<24x1xf32>
    %9 = vector.broadcast %8 : vector<24x1xf32> to vector<24x50xf32>
    %10 = arith.addf %7, %9 : vector<24x50xf32>
    %cst_9 = arith.constant 0.000000e+00 : f32
    %11 = vector.broadcast %cst_9 : f32 to vector<24x50xf32>
    %12 = arith.maximumf %10, %11 : vector<24x50xf32>
    %c0_10 = arith.constant 0 : index
    %c0_11 = arith.constant 0 : index
    %13 = vector.load %arg6[%c0_10, %c0_11] : memref<24x50xf32, #tpu.memory_space<vmem>>, vector<24x50xf32>
    tpu.vector_store %arg6[%c0_10, %c0_11], %12 {strides = array<i32>} : memref<24x50xf32, #tpu.memory_space<vmem>>, vector<24x50xf32>,
    return
  }
  func.func @transform_0(%arg0: i32) -> (i32, i32) {
    %c0_i32 = arith.constant 0 : i32
    %c0_i32_0 = arith.constant 0 : i32
    return %c0_i32, %arg0 : i32, i32
  }
  func.func @transform_1(%arg0: i32) -> (i32, i32) {
    %c0_i32 = arith.constant 0 : i32
    %c0_i32_0 = arith.constant 0 : i32
    %c0_i32_1 = arith.constant 0 : i32
    return %c0_i32, %c0_i32_0 : i32, i32
  }
  func.func @transform_2(%arg0: i32) -> (i32, i32) {
    %c0_i32 = arith.constant 0 : i32
    %c0_i32_0 = arith.constant 0 : i32
    return %c0_i32, %arg0 : i32, i32
  }
  func.func @transform_3(%arg0: i32) -> (i32, i32) {
    %c0_i32 = arith.constant 0 : i32
    %c0_i32_0 = arith.constant 0 : i32
    %c0_i32_1 = arith.constant 0 : i32
    return %c0_i32, %c0_i32_0 : i32, i32
  }
  func.func @transform_4(%arg0: i32) -> (i32, i32) {
    %c0_i32 = arith.constant 0 : i32
    %c0_i32_0 = arith.constant 0 : i32
    %c0_i32_1 = arith.constant 0 : i32
    return %c0_i32, %c0_i32_0 : i32, i32
  }
  func.func @transform_5(%arg0: i32) -> (i32, i32) {
    %c0_i32 = arith.constant 0 : i32
    %c0_i32_0 = arith.constant 0 : i32
    return %c0_i32, %arg0 : i32, i32
  }
}

module attributes {stable_mosaic.version = 11 : i64} {
  func.func @_spec_kernel(%arg0: i32, %arg1: i32, %arg2: memref<40x50xf32, #tpu.memory_space<vmem>>, %arg3: memref<24x8xbf16, #tpu.memory_space<vmem>>, %arg4: memref<24x1xf32, #tpu.memory_space<vmem>>, %arg5: memref<24x50xf32, #tpu.memory_space<vmem>>) attributes {dimension_semantics = [#tpu.dimension_semantics<parallel>, #tpu.dimension_semantics<arbitrary>], iteration_bounds = array<i64: 1, 5>, scalar_prefetch = 0 : i64, scratch_operands = 0 : i64, tpu.core_type = #tpu.core_type<tc>, window_params = [{transform_indices = @transform_0, window_bounds = array<i64: 40, 50>}, {pipeline_mode = #tpu.pipeline_mode<synchronous>, transform_indices = @transform_1, window_bounds = array<i64: 24, 8>}, {pipeline_mode = #tpu.pipeline_mode<synchronous>, transform_indices = @transform_2, window_bounds = array<i64: 24, 1>}, {transform_indices = @transform_3, window_bounds = array<i64: 24, 50>}]} {
    %c8_i32 = arith.constant 8 : i32
    %0 = arith.muli %arg1, %c8_i32 : i32
    %1 = tpu.assume_multiple %0, 8 : i32
    %2 = arith.index_cast %1 : i32 to index
    %c0 = arith.constant 0 : index
    %3 = vector.load %arg2[%2, %c0] : memref<40x50xf32, #tpu.memory_space<vmem>>, vector<8x50xf32>
    %4 = arith.truncf %3 : vector<8x50xf32> to vector<8x50xbf16>
    %c0_0 = arith.constant 0 : index
    %c0_1 = arith.constant 0 : index
    %5 = vector.load %arg3[%c0_0, %c0_1] : memref<24x8xbf16, #tpu.memory_space<vmem>>, vector<24x8xbf16>
    %cst = arith.constant dense<0.000000e+00> : vector<24x50xf32>
    %6 = tpu.matmul %5, %4, %cst {dimension_numbers = #tpu.dot_dimension_numbers<[1], [0], [0], [1], [0, 0, 1, 1], [], []>} : vector<24x8xbf16>, vector<8x50xbf16>, vector<24x50xf32> -> vector<24x50xf32>
    %c0_2 = arith.constant 0 : index
    %c0_3 = arith.constant 0 : index
    %7 = vector.load %arg4[%c0_2, %c0_3] : memref<24x1xf32, #tpu.memory_space<vmem>>, vector<24x1xf32>
    %8 = vector.broadcast %7 : vector<24x1xf32> to vector<24x50xf32>
    %9 = arith.addf %6, %8 : vector<24x50xf32>
    %cst_4 = arith.constant 0.000000e+00 : f32
    %10 = vector.broadcast %cst_4 : f32 to vector<24x50xf32>
    %11 = arith.maximumf %9, %10 : vector<24x50xf32>
    %c0_5 = arith.constant 0 : index
    %c0_6 = arith.constant 0 : index
    %12 = vector.load %arg5[%c0_5, %c0_6] : memref<24x50xf32, #tpu.memory_space<vmem>>, vector<24x50xf32>
    tpu.vector_store %arg5[%c0_5, %c0_6], %11 {strides = array<i32>} : memref<24x50xf32, #tpu.memory_space<vmem>>, vector<24x50xf32>,
    return
  }
  func.func @transform_0(%arg0: i32, %arg1: i32) -> (i32, i32) {
    %c0_i32 = arith.constant 0 : i32
    %c0_i32_0 = arith.constant 0 : i32
    return %c0_i32, %arg0 : i32, i32
  }
  func.func @transform_1(%arg0: i32, %arg1: i32) -> (i32, i32) {
    %c0_i32 = arith.constant 0 : i32
    %c0_i32_0 = arith.constant 0 : i32
    %c0_i32_1 = arith.constant 0 : i32
    return %c0_i32, %c0_i32_0 : i32, i32
  }
  func.func @transform_2(%arg0: i32, %arg1: i32) -> (i32, i32) {
    %c0_i32 = arith.constant 0 : i32
    %c0_i32_0 = arith.constant 0 : i32
    %c0_i32_1 = arith.constant 0 : i32
    return %c0_i32, %c0_i32_0 : i32, i32
  }
  func.func @transform_3(%arg0: i32, %arg1: i32) -> (i32, i32) {
    %c0_i32 = arith.constant 0 : i32
    return %arg1, %arg0 : i32, i32
  }
}

module attributes {stable_mosaic.version = 11 : i64} {
  func.func @_dense_kernel(%arg0: i32, %arg1: memref<120x50xbf16, #tpu.memory_space<vmem>>, %arg2: memref<128x120xbf16, #tpu.memory_space<vmem>>, %arg3: memref<128x1xf32, #tpu.memory_space<vmem>>, %arg4: memref<128x50xf32, #tpu.memory_space<vmem>>) attributes {dimension_semantics = [#tpu.dimension_semantics<parallel>], iteration_bounds = array<i64: 1>, scalar_prefetch = 0 : i64, scratch_operands = 0 : i64, tpu.core_type = #tpu.core_type<tc>, window_params = [{transform_indices = @transform_0, window_bounds = array<i64: 120, 50>}, {pipeline_mode = #tpu.pipeline_mode<synchronous>, transform_indices = @transform_1, window_bounds = array<i64: 128, 120>}, {pipeline_mode = #tpu.pipeline_mode<synchronous>, transform_indices = @transform_2, window_bounds = array<i64: 128, 1>}, {transform_indices = @transform_3, window_bounds = array<i64: 128, 50>}]} {
    %c0 = arith.constant 0 : index
    %c0_0 = arith.constant 0 : index
    %0 = vector.load %arg2[%c0, %c0_0] : memref<128x120xbf16, #tpu.memory_space<vmem>>, vector<128x120xbf16>
    %c0_1 = arith.constant 0 : index
    %c0_2 = arith.constant 0 : index
    %1 = vector.load %arg1[%c0_1, %c0_2] : memref<120x50xbf16, #tpu.memory_space<vmem>>, vector<120x50xbf16>
    %cst = arith.constant dense<0.000000e+00> : vector<128x50xf32>
    %2 = tpu.matmul %0, %1, %cst {dimension_numbers = #tpu.dot_dimension_numbers<[1], [0], [0], [1], [0, 0, 1, 1], [], []>} : vector<128x120xbf16>, vector<120x50xbf16>, vector<128x50xf32> -> vector<128x50xf32>
    %c0_3 = arith.constant 0 : index
    %c0_4 = arith.constant 0 : index
    %3 = vector.load %arg3[%c0_3, %c0_4] : memref<128x1xf32, #tpu.memory_space<vmem>>, vector<128x1xf32>
    %4 = vector.broadcast %3 : vector<128x1xf32> to vector<128x50xf32>
    %5 = arith.addf %2, %4 : vector<128x50xf32>
    %cst_5 = arith.constant 0.000000e+00 : f32
    %6 = vector.broadcast %cst_5 : f32 to vector<128x50xf32>
    %7 = arith.maximumf %5, %6 : vector<128x50xf32>
    %c0_6 = arith.constant 0 : index
    %c0_7 = arith.constant 0 : index
    %8 = vector.load %arg4[%c0_6, %c0_7] : memref<128x50xf32, #tpu.memory_space<vmem>>, vector<128x50xf32>
    tpu.vector_store %arg4[%c0_6, %c0_7], %7 {strides = array<i32>} : memref<128x50xf32, #tpu.memory_space<vmem>>, vector<128x50xf32>,
    return
  }
  func.func @transform_0(%arg0: i32) -> (i32, i32) {
    %c0_i32 = arith.constant 0 : i32
    %c0_i32_0 = arith.constant 0 : i32
    return %c0_i32, %arg0 : i32, i32
  }
  func.func @transform_1(%arg0: i32) -> (i32, i32) {
    %c0_i32 = arith.constant 0 : i32
    %c0_i32_0 = arith.constant 0 : i32
    %c0_i32_1 = arith.constant 0 : i32
    return %c0_i32, %c0_i32_0 : i32, i32
  }
  func.func @transform_2(%arg0: i32) -> (i32, i32) {
    %c0_i32 = arith.constant 0 : i32
    %c0_i32_0 = arith.constant 0 : i32
    %c0_i32_1 = arith.constant 0 : i32
    return %c0_i32, %c0_i32_0 : i32, i32
  }
  func.func @transform_3(%arg0: i32) -> (i32, i32) {
    %c0_i32 = arith.constant 0 : i32
    %c0_i32_0 = arith.constant 0 : i32
    return %c0_i32, %arg0 : i32, i32
  }
}

module attributes {stable_mosaic.version = 11 : i64} {
  func.func @_spec_kernel(%arg0: i32, %arg1: i32, %arg2: memref<264x50xf32, #tpu.memory_space<vmem>>, %arg3: memref<24x168xbf16, #tpu.memory_space<vmem>>, %arg4: memref<24x1xf32, #tpu.memory_space<vmem>>, %arg5: memref<24x50xf32, #tpu.memory_space<vmem>>) attributes {dimension_semantics = [#tpu.dimension_semantics<parallel>, #tpu.dimension_semantics<arbitrary>], iteration_bounds = array<i64: 1, 5>, scalar_prefetch = 0 : i64, scratch_operands = 0 : i64, tpu.core_type = #tpu.core_type<tc>, window_params = [{transform_indices = @transform_0, window_bounds = array<i64: 264, 50>}, {pipeline_mode = #tpu.pipeline_mode<synchronous>, transform_indices = @transform_1, window_bounds = array<i64: 24, 168>}, {pipeline_mode = #tpu.pipeline_mode<synchronous>, transform_indices = @transform_2, window_bounds = array<i64: 24, 1>}, {transform_indices = @transform_3, window_bounds = array<i64: 24, 50>}]} {
    %c24_i32 = arith.constant 24 : i32
    %0 = arith.muli %arg1, %c24_i32 : i32
    %1 = tpu.assume_multiple %0, 8 : i32
    %2 = arith.index_cast %1 : i32 to index
    %c0 = arith.constant 0 : index
    %3 = vector.load %arg2[%2, %c0] : memref<264x50xf32, #tpu.memory_space<vmem>>, vector<168x50xf32>
    %4 = arith.truncf %3 : vector<168x50xf32> to vector<168x50xbf16>
    %c0_0 = arith.constant 0 : index
    %c0_1 = arith.constant 0 : index
    %5 = vector.load %arg3[%c0_0, %c0_1] : memref<24x168xbf16, #tpu.memory_space<vmem>>, vector<24x168xbf16>
    %cst = arith.constant dense<0.000000e+00> : vector<24x50xf32>
    %6 = tpu.matmul %5, %4, %cst {dimension_numbers = #tpu.dot_dimension_numbers<[1], [0], [0], [1], [0, 0, 1, 1], [], []>} : vector<24x168xbf16>, vector<168x50xbf16>, vector<24x50xf32> -> vector<24x50xf32>
    %c0_2 = arith.constant 0 : index
    %c0_3 = arith.constant 0 : index
    %7 = vector.load %arg4[%c0_2, %c0_3] : memref<24x1xf32, #tpu.memory_space<vmem>>, vector<24x1xf32>
    %8 = vector.broadcast %7 : vector<24x1xf32> to vector<24x50xf32>
    %9 = arith.addf %6, %8 : vector<24x50xf32>
    %cst_4 = arith.constant 0.000000e+00 : f32
    %10 = vector.broadcast %cst_4 : f32 to vector<24x50xf32>
    %11 = arith.maximumf %9, %10 : vector<24x50xf32>
    %c0_5 = arith.constant 0 : index
    %c0_6 = arith.constant 0 : index
    %12 = vector.load %arg5[%c0_5, %c0_6] : memref<24x50xf32, #tpu.memory_space<vmem>>, vector<24x50xf32>
    tpu.vector_store %arg5[%c0_5, %c0_6], %11 {strides = array<i32>} : memref<24x50xf32, #tpu.memory_space<vmem>>, vector<24x50xf32>,
    return
  }
  func.func @transform_0(%arg0: i32, %arg1: i32) -> (i32, i32) {
    %c0_i32 = arith.constant 0 : i32
    %c0_i32_0 = arith.constant 0 : i32
    return %c0_i32, %arg0 : i32, i32
  }
  func.func @transform_1(%arg0: i32, %arg1: i32) -> (i32, i32) {
    %c0_i32 = arith.constant 0 : i32
    %c0_i32_0 = arith.constant 0 : i32
    %c0_i32_1 = arith.constant 0 : i32
    return %c0_i32, %c0_i32_0 : i32, i32
  }
  func.func @transform_2(%arg0: i32, %arg1: i32) -> (i32, i32) {
    %c0_i32 = arith.constant 0 : i32
    %c0_i32_0 = arith.constant 0 : i32
    %c0_i32_1 = arith.constant 0 : i32
    return %c0_i32, %c0_i32_0 : i32, i32
  }
  func.func @transform_3(%arg0: i32, %arg1: i32) -> (i32, i32) {
    %c0_i32 = arith.constant 0 : i32
    return %arg1, %arg0 : i32, i32
  }
}

module attributes {stable_mosaic.version = 11 : i64} {
  func.func @_spec_res_kernel(%arg0: i32, %arg1: i32, %arg2: memref<264x50xf32, #tpu.memory_space<vmem>>, %arg3: memref<24x168xbf16, #tpu.memory_space<vmem>>, %arg4: memref<24x50xf32, #tpu.memory_space<vmem>>, %arg5: memref<24x1xf32, #tpu.memory_space<vmem>>, %arg6: memref<24x1xf32, #tpu.memory_space<vmem>>, %arg7: memref<24x50xf32, #tpu.memory_space<vmem>>) attributes {dimension_semantics = [#tpu.dimension_semantics<parallel>, #tpu.dimension_semantics<arbitrary>], iteration_bounds = array<i64: 1, 5>, scalar_prefetch = 0 : i64, scratch_operands = 0 : i64, tpu.core_type = #tpu.core_type<tc>, window_params = [{transform_indices = @transform_0, window_bounds = array<i64: 264, 50>}, {pipeline_mode = #tpu.pipeline_mode<synchronous>, transform_indices = @transform_1, window_bounds = array<i64: 24, 168>}, {transform_indices = @transform_2, window_bounds = array<i64: 24, 50>}, {pipeline_mode = #tpu.pipeline_mode<synchronous>, transform_indices = @transform_3, window_bounds = array<i64: 24, 1>}, {pipeline_mode = #tpu.pipeline_mode<synchronous>, transform_indices = @transform_4, window_bounds = array<i64: 24, 1>}, {transform_indices = @transform_5, window_bounds = array<i64: 24, 50>}]} {
    %c24_i32 = arith.constant 24 : i32
    %0 = arith.muli %arg1, %c24_i32 : i32
    %1 = tpu.assume_multiple %0, 8 : i32
    %2 = arith.index_cast %1 : i32 to index
    %c0 = arith.constant 0 : index
    %3 = vector.load %arg2[%2, %c0] : memref<264x50xf32, #tpu.memory_space<vmem>>, vector<168x50xf32>
    %4 = arith.truncf %3 : vector<168x50xf32> to vector<168x50xbf16>
    %c0_0 = arith.constant 0 : index
    %c0_1 = arith.constant 0 : index
    %5 = vector.load %arg3[%c0_0, %c0_1] : memref<24x168xbf16, #tpu.memory_space<vmem>>, vector<24x168xbf16>
    %cst = arith.constant dense<0.000000e+00> : vector<24x50xf32>
    %6 = tpu.matmul %5, %4, %cst {dimension_numbers = #tpu.dot_dimension_numbers<[1], [0], [0], [1], [0, 0, 1, 1], [], []>} : vector<24x168xbf16>, vector<168x50xbf16>, vector<24x50xf32> -> vector<24x50xf32>
    %c0_2 = arith.constant 0 : index
    %c0_3 = arith.constant 0 : index
    %7 = vector.load %arg5[%c0_2, %c0_3] : memref<24x1xf32, #tpu.memory_space<vmem>>, vector<24x1xf32>
    %c0_4 = arith.constant 0 : index
    %c0_5 = arith.constant 0 : index
    %8 = vector.load %arg4[%c0_4, %c0_5] : memref<24x50xf32, #tpu.memory_space<vmem>>, vector<24x50xf32>
    %9 = vector.broadcast %7 : vector<24x1xf32> to vector<24x50xf32>
    %10 = arith.mulf %9, %8 : vector<24x50xf32>
    %11 = arith.addf %6, %10 : vector<24x50xf32>
    %c0_6 = arith.constant 0 : index
    %c0_7 = arith.constant 0 : index
    %12 = vector.load %arg6[%c0_6, %c0_7] : memref<24x1xf32, #tpu.memory_space<vmem>>, vector<24x1xf32>
    %13 = vector.broadcast %12 : vector<24x1xf32> to vector<24x50xf32>
    %14 = arith.addf %11, %13 : vector<24x50xf32>
    %cst_8 = arith.constant 0.000000e+00 : f32
    %15 = vector.broadcast %cst_8 : f32 to vector<24x50xf32>
    %16 = arith.maximumf %14, %15 : vector<24x50xf32>
    %c0_9 = arith.constant 0 : index
    %c0_10 = arith.constant 0 : index
    %17 = vector.load %arg7[%c0_9, %c0_10] : memref<24x50xf32, #tpu.memory_space<vmem>>, vector<24x50xf32>
    tpu.vector_store %arg7[%c0_9, %c0_10], %16 {strides = array<i32>} : memref<24x50xf32, #tpu.memory_space<vmem>>, vector<24x50xf32>,
    return
  }
  func.func @transform_0(%arg0: i32, %arg1: i32) -> (i32, i32) {
    %c0_i32 = arith.constant 0 : i32
    %c0_i32_0 = arith.constant 0 : i32
    return %c0_i32, %arg0 : i32, i32
  }
  func.func @transform_1(%arg0: i32, %arg1: i32) -> (i32, i32) {
    %c0_i32 = arith.constant 0 : i32
    %c0_i32_0 = arith.constant 0 : i32
    %c0_i32_1 = arith.constant 0 : i32
    return %c0_i32, %c0_i32_0 : i32, i32
  }
  func.func @transform_2(%arg0: i32, %arg1: i32) -> (i32, i32) {
    %c0_i32 = arith.constant 0 : i32
    return %arg1, %arg0 : i32, i32
  }
  func.func @transform_3(%arg0: i32, %arg1: i32) -> (i32, i32) {
    %c0_i32 = arith.constant 0 : i32
    %c0_i32_0 = arith.constant 0 : i32
    %c0_i32_1 = arith.constant 0 : i32
    return %c0_i32, %c0_i32_0 : i32, i32
  }
  func.func @transform_4(%arg0: i32, %arg1: i32) -> (i32, i32) {
    %c0_i32 = arith.constant 0 : i32
    %c0_i32_0 = arith.constant 0 : i32
    %c0_i32_1 = arith.constant 0 : i32
    return %c0_i32, %c0_i32_0 : i32, i32
  }
  func.func @transform_5(%arg0: i32, %arg1: i32) -> (i32, i32) {
    %c0_i32 = arith.constant 0 : i32
    return %arg1, %arg0 : i32, i32
  }
}

module attributes {stable_mosaic.version = 11 : i64} {
  func.func @_dense_kernel(%arg0: i32, %arg1: memref<152x2xbf16, #tpu.memory_space<vmem>>, %arg2: memref<4x152xbf16, #tpu.memory_space<vmem>>, %arg3: memref<4x1xf32, #tpu.memory_space<vmem>>, %arg4: memref<4x2xf32, #tpu.memory_space<vmem>>) attributes {dimension_semantics = [#tpu.dimension_semantics<parallel>], iteration_bounds = array<i64: 1>, scalar_prefetch = 0 : i64, scratch_operands = 0 : i64, tpu.core_type = #tpu.core_type<tc>, window_params = [{transform_indices = @transform_0, window_bounds = array<i64: 152, 2>}, {pipeline_mode = #tpu.pipeline_mode<synchronous>, transform_indices = @transform_1, window_bounds = array<i64: 4, 152>}, {pipeline_mode = #tpu.pipeline_mode<synchronous>, transform_indices = @transform_2, window_bounds = array<i64: 4, 1>}, {transform_indices = @transform_3, window_bounds = array<i64: 4, 2>}]} {
    %c0 = arith.constant 0 : index
    %c0_0 = arith.constant 0 : index
    %0 = vector.load %arg2[%c0, %c0_0] : memref<4x152xbf16, #tpu.memory_space<vmem>>, vector<4x152xbf16>
    %c0_1 = arith.constant 0 : index
    %c0_2 = arith.constant 0 : index
    %1 = vector.load %arg1[%c0_1, %c0_2] : memref<152x2xbf16, #tpu.memory_space<vmem>>, vector<152x2xbf16>
    %cst = arith.constant dense<0.000000e+00> : vector<4x2xf32>
    %2 = tpu.matmul %0, %1, %cst {dimension_numbers = #tpu.dot_dimension_numbers<[1], [0], [0], [1], [0, 0, 1, 1], [], []>} : vector<4x152xbf16>, vector<152x2xbf16>, vector<4x2xf32> -> vector<4x2xf32>
    %c0_3 = arith.constant 0 : index
    %c0_4 = arith.constant 0 : index
    %3 = vector.load %arg3[%c0_3, %c0_4] : memref<4x1xf32, #tpu.memory_space<vmem>>, vector<4x1xf32>
    %4 = vector.broadcast %3 : vector<4x1xf32> to vector<4x2xf32>
    %5 = arith.addf %2, %4 : vector<4x2xf32>
    %c0_5 = arith.constant 0 : index
    %c0_6 = arith.constant 0 : index
    %6 = vector.load %arg4[%c0_5, %c0_6] : memref<4x2xf32, #tpu.memory_space<vmem>>, vector<4x2xf32>
    tpu.vector_store %arg4[%c0_5, %c0_6], %5 {strides = array<i32>} : memref<4x2xf32, #tpu.memory_space<vmem>>, vector<4x2xf32>,
    return
  }
  func.func @transform_0(%arg0: i32) -> (i32, i32) {
    %c0_i32 = arith.constant 0 : i32
    %c0_i32_0 = arith.constant 0 : i32
    return %c0_i32, %arg0 : i32, i32
  }
  func.func @transform_1(%arg0: i32) -> (i32, i32) {
    %c0_i32 = arith.constant 0 : i32
    %c0_i32_0 = arith.constant 0 : i32
    %c0_i32_1 = arith.constant 0 : i32
    return %c0_i32, %c0_i32_0 : i32, i32
  }
  func.func @transform_2(%arg0: i32) -> (i32, i32) {
    %c0_i32 = arith.constant 0 : i32
    %c0_i32_0 = arith.constant 0 : i32
    %c0_i32_1 = arith.constant 0 : i32
    return %c0_i32, %c0_i32_0 : i32, i32
  }
  func.func @transform_3(%arg0: i32) -> (i32, i32) {
    %c0_i32 = arith.constant 0 : i32
    %c0_i32_0 = arith.constant 0 : i32
    return %c0_i32, %arg0 : i32, i32
  }
}

</mosaic_0001>

<bundles_post_ra>
// kernel: dcrn_forward.12
= control target key start
LH: loop header
LB: loop body
LE: loop exit
PB: predicated region body
PF: predicated region fallthrough
CT: control target
= control target key end

     0   :  { %vm60_vm0 = vcmask 130048   ;;  %v262_v1 = vmov 0   ;;  %vm153_vm1 = vcmask 195584   ;;  %vm118_vm2 = vcmask 408576   ;;  %s359_s0 = inlined_call_operand.vmem [shape: bf16[16,50], index: 0, kind: input, shape index: {}]   ;;  %s360_s1 = inlined_call_operand.vmem [shape: bf16[24,16], index: 1, kind: input, shape index: {}]   ;;  %s361_s2 = inlined_call_operand.vmem [shape: f32[24,1], index: 2, kind: input, shape index: {}]   ;;  %s362_s4 = inlined_call_operand.vmem [shape: f32[24,1], index: 4, kind: input, shape index: {}]   ;;  %s363_s3 = inlined_call_operand.vmem [shape: bf16[24,24], index: 3, kind: input, shape index: {}]   ;;  %s364_s5 = inlined_call_operand.vmem [shape: f32[24,50], index: 5, kind: output, shape index: {0}]   ;;  %s365_s6 = inlined_call_operand.vmem [shape: f32[24,50], index: 6, kind: output, shape index: {1}]  }
   0x1   :  { %v257_v0 = vld [vmem:[%s359_s0] sm:$0xff]   ;;  %255 = vset.pattern.permute.xlu0 %v262_v1  ;;  %256 = vset.pattern.permute.xlu1 %v262_v1  ;;  %v259_v3 = vld [vmem:[%s360_s1 + $0x8] ss:$0 sps:$4 sm:$0xff]   ;;  %v30_v5 = vld [vmem:[%s361_s2 + $0x10] sm:$0xff]  ;;  %vm160_vm3 = vcmask 1043456  }
   0x2   :  { %239 = vmatprep.subr.bf16.mxu0 %v257_v0  ;;  %v258_v2 = vld [vmem:[%s360_s1] sm:$0xff]   ;;  %v29_v6 = vld [vmem:[%s361_s2 + $0x8] sm:$0xff]  ;;  %43 = vperm.xlu1 %256, %v30_v5   ;;  %v129_v9 = vld [vmem:[%s362_s4 + $0x10] sm:$0xff] }
   0x3   :  { %v28_v4 = vld [vmem:[%s361_s2] sm:$0xff]  ;;  %240 = vmatpush3.bf16.msra.mxu0 %v257_v0  ;;  %241 = vmatprep.mubr.msk.bf16.mxu0 %vm60_vm0, %v258_v2  ;;  %v128_v8 = vld [vmem:[%s362_s4 + $0x8] sm:$0xff] }
   0x4   :  { %33 = vperm.xlu0 %255, %v28_v4   ;;  %v127_v7 = vld [vmem:[%s362_s4] sm:$0xff]  ;;  %v261_v27 = vld [vmem:[%s363_s3 + $0x8] ss:$0 sps:$4 sm:$0xff]  }
   0x5   :  { %v260_v10 = vld [vmem:[%s363_s3] sm:$0xff]  }
   0x6   :  { %242 = vmatmul.mubr.msk.bf16.vlgmr.msra.gmra.mrb[0].mxu0 %vm60_vm0, %v259_v3  ;;  %132 = vperm.xlu1 %256, %v127_v7  }
   0x7   :  { %249 = vmatprep.mubr.msk.bf16.mxu1 %vm153_vm1, %v260_v10 }
   0x8   :  { %38 = vperm.xlu0 %255, %v29_v6  }
   0xa   :  { %142 = vperm.xlu1 %256, %v129_v9  }
   0xc   :  { %137 = vperm.xlu0 %255, %v128_v8  }
  0x81   :  { %v44_v12 = vpop.permute.xlu1 %43 }
  0x83   :  { %v34_v11 = vpop.permute.xlu0 %33 }
  0x85   :  { %v133_v28 = vpop.permute.xlu1 %132 }
  0x87   :  { %v39_v18 = vpop.permute.xlu0 %38 }
  0x89   :  { %v143_v29 = vpop.permute.xlu1 %142 }
  0x8b   :  { %v138_v35 = vpop.permute.xlu0 %137 }
  0xd9   :  { %v243_v13 = vpop.f32.mrb[0].mxu0 }
  0xda   :  { %v110_v14 = vadd.f32 %v243_v13, %v44_v12  ;;  %v101_v15 = vpop.f32.mrb[1].mxu0 }
  0xdb   :  { %v102_v16 = vadd.f32 %v101_v15, %v34_v11  ;;  %v244_v17 = vpop.f32.mrb[2].mxu0 }
  0xdc   :  { %v117_v19 = vmax.f32 %v110_v14, 0.0  ;;  %v104_v20 = vpop.f32.mrb[3].mxu0 }
  0xdd   :  { %v115_v21 = vmax.f32 %v102_v16, 0.0  ;;  %v105_v22 = vadd.f32 %v104_v20, %v39_v18 }
  0xde   :  { %121 = vst.msk [vmem:[%s364_s5 + $0x10] sm:$0xff] %vm118_vm2, %v117_v19  ;;  %v126_v25 = vpack.c.bf16 %v117_v19, %v117_v19 }
  0xdf   :  { %119 = vst.msk [vmem:[%s364_s5] sm:$0xff] %vm118_vm2, %v115_v21  ;;  %v116_v23 = vmax.f32 %v105_v22, 0.0 }
  0xe0   :  { %v162_v26 = vsel %vm160_vm3, %v126_v25, 0 }
  0xe1   :  { %120 = vst.msk [vmem:[%s364_s5 + $0x8] sm:$0xff] %vm118_vm2, %v116_v23  ;;  %v125_v24 = vpack.c.bf16 %v116_v23, %v115_v21 }
  0xe3   :  { %245 = vmatprep.subr.bf16.mxu1 %v125_v24 }
  0xe4   :  { %246 = vmatpush3.bf16.msra.mxu1 %v125_v24 }
  0xe5   :  { %253 = vmatprep.subr.msk.bf16.mxu1 %vm160_vm3, %v126_v25 }
  0xe8   :  { %248 = vmatpush3.bf16.msra.mxu1 %v162_v26 }
  0xeb   :  { %250 = vmatmul.mubr.msk.bf16.vlgmr.msra.gmra.mrb[0].mxu1 %vm153_vm1, %v261_v27 }
 0x1be   :  { %v251_v30 = vpop.f32.mrb[0].mxu1 }
 0x1bf   :  { %v207_v31 = vadd.f32 %v251_v30, %v143_v29  ;;  %v198_v32 = vpop.f32.mrb[1].mxu1 }
 0x1c0   :  { %v199_v33 = vadd.f32 %v198_v32, %v133_v28  ;;  %v252_v34 = vpop.f32.mrb[2].mxu1 }
 0x1c1   :  { %214 = vst.msk [vmem:[%s365_s6 + $0x10] sm:$0xff] %vm118_vm2, %v207_v31  ;;  %v201_v36 = vpop.f32.mrb[3].mxu1 }
 0x1c2   :  { %212 = vst.msk [vmem:[%s365_s6] sm:$0xff] %vm118_vm2, %v199_v33  ;;  %v202_v37 = vadd.f32 %v201_v36, %v138_v35 }
 0x1c4   :  { %213 = vst.msk [vmem:[%s365_s6 + $0x8] sm:$0xff] %vm118_vm2, %v202_v37 }

// kernel: dcrn_forward.13
= control target key start
LH: loop header
LB: loop body
LE: loop exit
PB: predicated region body
PF: predicated region fallthrough
CT: control target
= control target key end

     0   :  { %v299_v0 = vmov 0   ;;  %vm159_vm0 = vcmask 719872   ;;  %vm166_vm1 = vcmask 1043456   ;;  %vm221_vm2 = vcmask 408576   ;;  %s421_s0 = inlined_call_operand.vmem [shape: bf16[216,50], index: 0, kind: input, shape index: {}]   ;;  %s422_s1 = inlined_call_operand.vmem [shape: bf16[24,216], index: 1, kind: input, shape index: {}]   ;;  %s423_s2 = inlined_call_operand.vmem [shape: f32[24,1], index: 2, kind: input, shape index: {}]   ;;  %s424_s3 = inlined_call_operand.vmem [shape: f32[24,50], index: 3, kind: output, shape index: {}]  }
   0x1   :  { %170 = vmatprep.subr.bf16.mxu0 %v299_v0  ;;  %249 = vmatprep.subr.bf16.mxu1 %v299_v0  ;;  %v280_v1 = vld [vmem:[%s421_s0] sm:$0xff]   ;;  %v281_v2 = vld [vmem:[%s421_s0 + $0x8] sm:$0xff]   ;;  %v282_v3 = vld [vmem:[%s421_s0 + $0x10] sm:$0xff]  }
   0x2   :  { %278 = vset.pattern.permute.xlu0 %v299_v0  ;;  %279 = vset.pattern.permute.xlu1 %v299_v0  ;;  %v283_v4 = vld [vmem:[%s421_s0 + $0x18] sm:$0xff]   ;;  %v284_v5 = vld [vmem:[%s421_s0 + $0x20] sm:$0xff]   ;;  %v17_v7 = vld [vmem:[%s422_s1 + $0x10] sm:$0xff] }
   0x3   :  { %171 = vmatpush1.bf16.msra.mxu0 %v280_v1  ;;  %263 = vmatpush1.bf16.msra.mxu1 %v280_v1  ;;  %v296_v6 = vld [vmem:[%s422_s1 + $0x4] ss:$8 sps:$4 sm:$0xff]   ;;  %v232_v9 = vcombine.high %v17_v7, %v17_v7  ;;  %v47_v10 = vld [vmem:[%s423_s2 + $0x10] sm:$0xff]  ;;  %v287_v14 = vld [vmem:[%s421_s0 + $0x38] sm:$0xff]   ;;  %v231_v23 = vcombine.low %v17_v7, %v17_v7 }
   0x4   :  { %172 = vmatprep.subr.bf16.mxu0 %v299_v0  ;;  %250 = vmatprep.subr.bf16.mxu1 %v299_v0  ;;  %v45_v8 = vld [vmem:[%s423_s2] sm:$0xff]  ;;  %v46_v11 = vld [vmem:[%s423_s2 + $0x8] sm:$0xff]  ;;  %v286_v13 = vld [vmem:[%s421_s0 + $0x30] sm:$0xff]  }
   0x5   :  { %247 = vmatprep.mubr.msk.bf16.mxu0 %vm159_vm0, %v296_v6  ;;  %50 = vperm.xlu0 %278, %v45_v8   ;;  %v285_v12 = vld [vmem:[%s421_s0 + $0x28] sm:$0xff]   ;;  %v288_v15 = vld [vmem:[%s421_s0 + $0x40] sm:$0xff]   ;;  %v290_v17 = vld [vmem:[%s421_s0 + $0x50] sm:$0xff]  }
   0x6   :  { %60 = vperm.xlu1 %279, %v47_v10   ;;  %248 = vmatprep.mubr.msk.bf16.mxu1 %vm159_vm0, %v232_v9  ;;  %v289_v16 = vld [vmem:[%s421_s0 + $0x48] sm:$0xff]   ;;  %v291_v18 = vld [vmem:[%s421_s0 + $0x58] sm:$0xff]   ;;  %v292_v19 = vld [vmem:[%s421_s0 + $0x60] sm:$0xff]  }
   0x7   :  { %173 = vmatpush1.bf16.msra.mxu0 %v281_v2  ;;  %264 = vmatpush1.bf16.msra.mxu1 %v281_v2  ;;  %v293_v20 = vld [vmem:[%s421_s0 + $0x68] ss:$0 sps:$4 sm:$0xff]  }
   0x8   :  { %174 = vmatprep.subr.bf16.mxu0 %v299_v0  ;;  %251 = vmatprep.subr.bf16.mxu1 %v299_v0  ;;  %v168_v21 = vsel %vm166_vm1, %v293_v20, 0  ;;  %v294_v22 = vld [vmem:[%s422_s1] ss:$8 sps:$4 sm:$0xff]  }
   0x9   :  { %55 = vperm.xlu0 %278, %v46_v11  }
   0xb   :  { %175 = vmatpush1.bf16.msra.mxu0 %v282_v3  ;;  %265 = vmatpush1.bf16.msra.mxu1 %v282_v3 }
   0xc   :  { %176 = vmatprep.subr.bf16.mxu0 %v299_v0  ;;  %252 = vmatprep.subr.bf16.mxu1 %v299_v0 }
   0xf   :  { %177 = vmatpush1.bf16.msra.mxu0 %v283_v4  ;;  %266 = vmatpush1.bf16.msra.mxu1 %v283_v4 }
  0x10   :  { %178 = vmatprep.subr.bf16.mxu0 %v299_v0  ;;  %253 = vmatprep.subr.bf16.mxu1 %v299_v0 }
  0x13   :  { %179 = vmatpush1.bf16.msra.mxu0 %v284_v5  ;;  %267 = vmatpush1.bf16.msra.mxu1 %v284_v5 }
  0x14   :  { %180 = vmatprep.subr.bf16.mxu0 %v299_v0  ;;  %254 = vmatprep.subr.bf16.mxu1 %v299_v0 }
  0x17   :  { %181 = vmatpush1.bf16.msra.mxu0 %v285_v12  ;;  %268 = vmatpush1.bf16.msra.mxu1 %v285_v12 }
  0x18   :  { %182 = vmatprep.subr.bf16.mxu0 %v299_v0  ;;  %255 = vmatprep.subr.bf16.mxu1 %v299_v0 }
  0x1b   :  { %183 = vmatpush1.bf16.msra.mxu0 %v286_v13  ;;  %269 = vmatpush1.bf16.msra.mxu1 %v286_v13 }
  0x1c   :  { %184 = vmatprep.subr.bf16.mxu0 %v299_v0  ;;  %256 = vmatprep.subr.bf16.mxu1 %v299_v0 }
  0x1f   :  { %185 = vmatpush1.bf16.msra.mxu0 %v287_v14  ;;  %270 = vmatpush1.bf16.msra.mxu1 %v287_v14 }
  0x20   :  { %186 = vmatprep.subr.bf16.mxu0 %v299_v0  ;;  %257 = vmatprep.subr.bf16.mxu1 %v299_v0 }
  0x23   :  { %187 = vmatpush1.bf16.msra.mxu0 %v288_v15  ;;  %271 = vmatpush1.bf16.msra.mxu1 %v288_v15 }
  0x24   :  { %188 = vmatprep.subr.bf16.mxu0 %v299_v0  ;;  %258 = vmatprep.subr.bf16.mxu1 %v299_v0 }
  0x27   :  { %189 = vmatpush1.bf16.msra.mxu0 %v289_v16  ;;  %272 = vmatpush1.bf16.msra.mxu1 %v289_v16 }
  0x28   :  { %190 = vmatprep.subr.bf16.mxu0 %v299_v0  ;;  %259 = vmatprep.subr.bf16.mxu1 %v299_v0 }
  0x2b   :  { %191 = vmatpush1.bf16.msra.mxu0 %v290_v17  ;;  %273 = vmatpush1.bf16.msra.mxu1 %v290_v17 }
  0x2c   :  { %192 = vmatprep.subr.bf16.mxu0 %v299_v0  ;;  %260 = vmatprep.subr.bf16.mxu1 %v299_v0 }
  0x2f   :  { %193 = vmatpush1.bf16.msra.mxu0 %v291_v18  ;;  %274 = vmatpush1.bf16.msra.mxu1 %v291_v18 }
  0x30   :  { %194 = vmatprep.subr.bf16.mxu0 %v299_v0  ;;  %261 = vmatprep.subr.bf16.mxu1 %v299_v0 }
  0x33   :  { %195 = vmatpush1.bf16.msra.mxu0 %v292_v19  ;;  %275 = vmatpush1.bf16.msra.mxu1 %v292_v19 }
  0x34   :  { %196 = vmatprep.subr.bf16.mxu0 %v299_v0  ;;  %262 = vmatprep.subr.bf16.mxu1 %v299_v0 }
  0x37   :  { %197 = vmatpush1.bf16.msra.mxu0 %v168_v21  ;;  %276 = vmatpush1.bf16.msra.mxu1 %v168_v21 }
  0x3a   :  { %203 = vmatmul.mubr.bf16.vlgmr.msra.gmra.mrb[0].mxu0 %v294_v22  ;;  %211 = vmatmul.mubr.bf16.vlgmr.msra.gmra.mrb[0].mxu1 %v231_v23 }
  0x84   :  { %v51_v24 = vpop.permute.xlu0 %50 }
  0x85   :  { %v61_v25 = vpop.permute.xlu1 %60 }
  0x88   :  { %v56_v26 = vpop.permute.xlu0 %55 }
 0x10d   :  { %v204_v27 = vpop.f32.mrb[0].mxu0  ;;  %v212_v28 = vpop.f32.mrb[0].mxu1 }
 0x10e   :  { %v205_v29 = vadd.f32 %v204_v27, %v51_v24  ;;  %v206_v30 = vpop.f32.mrb[1].mxu0  ;;  %v214_v31 = vpop.f32.mrb[1].mxu1  ;;  %v213_v32 = vadd.f32 %v212_v28, %v61_v25 }
 0x10f   :  { %v207_v33 = vpop.f32.mrb[2].mxu0  ;;  %v215_v34 = vpop.f32.mrb[2].mxu1 }
 0x110   :  { %v218_v35 = vmax.f32 %v205_v29, 0.0  ;;  %v220_v36 = vmax.f32 %v213_v32, 0.0  ;;  %v208_v37 = vadd.f32 %v207_v33, %v56_v26  ;;  %v209_v38 = vpop.f32.mrb[3].mxu0  ;;  %v216_v39 = vpop.f32.mrb[3].mxu1 }
 0x112   :  { %222 = vst.msk [vmem:[%s424_s3] sm:$0xff] %vm221_vm2, %v218_v35  ;;  %224 = vst.msk [vmem:[%s424_s3 + $0x10] sm:$0xff] %vm221_vm2, %v220_v36  ;;  %v219_v40 = vmax.f32 %v208_v37, 0.0 }
 0x114   :  { %223 = vst.msk [vmem:[%s424_s3 + $0x8] sm:$0xff] %vm221_vm2, %v219_v40 }

// kernel: dcrn_forward.14
= control target key start
LH: loop header
LB: loop body
LE: loop exit
PB: predicated region body
PF: predicated region fallthrough
CT: control target
= control target key end

     0   :  { %v332_v0 = vmov 0   ;;  %vm171_vm0 = vcmask 719872   ;;  %vm178_vm1 = vcmask 1043456   ;;  %vm254_vm2 = vcmask 408576   ;;  %s488_s0 = inlined_call_operand.vmem [shape: bf16[216,50], index: 0, kind: input, shape index: {}]   ;;  %s489_s1 = inlined_call_operand.vmem [shape: bf16[24,216], index: 1, kind: input, shape index: {}]   ;;  %s490_s3 = inlined_call_operand.vmem [shape: f32[24,1], index: 3, kind: input, shape index: {}]   ;;  %s491_s4 = inlined_call_operand.vmem [shape: f32[24,1], index: 4, kind: input, shape index: {}]   ;;  %s492_s2 = inlined_call_operand.vmem [shape: f32[24,50], index: 2, kind: input, shape index: {}]   ;;  %s493_s5 = inlined_call_operand.vmem [shape: f32[24,50], index: 5, kind: output, shape index: {}]  }
   0x1   :  { %182 = vmatprep.subr.bf16.mxu0 %v332_v0  ;;  %282 = vmatprep.subr.bf16.mxu1 %v332_v0  ;;  %v313_v1 = vld [vmem:[%s488_s0] sm:$0xff]   ;;  %v314_v2 = vld [vmem:[%s488_s0 + $0x8] sm:$0xff]   ;;  %v315_v3 = vld [vmem:[%s488_s0 + $0x10] sm:$0xff]  }
   0x2   :  { %312 = vset.pattern.permute.xlu1 %v332_v0  ;;  %311 = vset.pattern.permute.xlu0 %v332_v0  ;;  %v316_v4 = vld [vmem:[%s488_s0 + $0x18] sm:$0xff]   ;;  %v317_v5 = vld [vmem:[%s488_s0 + $0x20] sm:$0xff]   ;;  %v396_v7 = vld [vmem:[%s489_s1 + $0x10] sm:$0xff] }
   0x3   :  { %183 = vmatpush1.bf16.msra.mxu0 %v313_v1  ;;  %296 = vmatpush1.bf16.msra.mxu1 %v313_v1  ;;  %v329_v6 = vld [vmem:[%s489_s1 + $0x4] ss:$8 sps:$4 sm:$0xff]   ;;  %v53_v8 = vld [vmem:[%s490_s3 + $0x10] sm:$0xff]  ;;  %v265_v10 = vcombine.high %v396_v7, %v396_v7  ;;  %v320_v17 = vld [vmem:[%s488_s0 + $0x38] sm:$0xff]   ;;  %v264_v26 = vcombine.low %v396_v7, %v396_v7 }
   0x4   :  { %184 = vmatprep.subr.bf16.mxu0 %v332_v0  ;;  %283 = vmatprep.subr.bf16.mxu1 %v332_v0  ;;  %v51_v9 = vld [vmem:[%s490_s3] sm:$0xff]  ;;  %v318_v12 = vld [vmem:[%s488_s0 + $0x28] sm:$0xff]   ;;  %v232_v14 = vld [vmem:[%s491_s4 + $0x10] sm:$0xff] }
   0x5   :  { %280 = vmatprep.mubr.msk.bf16.mxu0 %vm171_vm0, %v329_v6  ;;  %69 = vperm.xlu1 %312, %v53_v8   ;;  %v230_v11 = vld [vmem:[%s491_s4] sm:$0xff]  ;;  %v52_v13 = vld [vmem:[%s490_s3 + $0x8] sm:$0xff]  ;;  %v319_v15 = vld [vmem:[%s488_s0 + $0x30] sm:$0xff]  }
   0x6   :  { %59 = vperm.xlu0 %311, %v51_v9   ;;  %281 = vmatprep.mubr.msk.bf16.mxu1 %vm171_vm0, %v265_v10  ;;  %v231_v16 = vld [vmem:[%s491_s4 + $0x8] sm:$0xff]  ;;  %v321_v18 = vld [vmem:[%s488_s0 + $0x40] sm:$0xff]   ;;  %v323_v20 = vld [vmem:[%s488_s0 + $0x50] sm:$0xff]  }
   0x7   :  { %185 = vmatpush1.bf16.msra.mxu0 %v314_v2  ;;  %297 = vmatpush1.bf16.msra.mxu1 %v314_v2  ;;  %v322_v19 = vld [vmem:[%s488_s0 + $0x48] sm:$0xff]   ;;  %v324_v21 = vld [vmem:[%s488_s0 + $0x58] sm:$0xff]   ;;  %v325_v22 = vld [vmem:[%s488_s0 + $0x60] sm:$0xff]  }
   0x8   :  { %186 = vmatprep.subr.bf16.mxu0 %v332_v0  ;;  %284 = vmatprep.subr.bf16.mxu1 %v332_v0  ;;  %v326_v23 = vld [vmem:[%s488_s0 + $0x68] ss:$0 sps:$4 sm:$0xff]   ;;  %v56_v30 = vld [vmem:[%s492_s2 + $0x10] sm:$0xff]  ;;  %v54_v31 = vld [vmem:[%s492_s2] sm:$0xff] }
   0x9   :  { %235 = vperm.xlu1 %312, %v230_v11   ;;  %v180_v24 = vsel %vm178_vm1, %v326_v23, 0  ;;  %v327_v25 = vld [vmem:[%s489_s1] ss:$8 sps:$4 sm:$0xff]  }
   0xa   :  { %64 = vperm.xlu0 %311, %v52_v13   ;;  %v55_v33 = vld [vmem:[%s492_s2 + $0x8] sm:$0xff] }
   0xb   :  { %187 = vmatpush1.bf16.msra.mxu0 %v315_v3  ;;  %298 = vmatpush1.bf16.msra.mxu1 %v315_v3 }
   0xc   :  { %188 = vmatprep.subr.bf16.mxu0 %v332_v0  ;;  %285 = vmatprep.subr.bf16.mxu1 %v332_v0 }
   0xd   :  { %245 = vperm.xlu1 %312, %v232_v14  }
   0xe   :  { %240 = vperm.xlu0 %311, %v231_v16  }
   0xf   :  { %189 = vmatpush1.bf16.msra.mxu0 %v316_v4  ;;  %299 = vmatpush1.bf16.msra.mxu1 %v316_v4 }
  0x10   :  { %190 = vmatprep.subr.bf16.mxu0 %v332_v0  ;;  %286 = vmatprep.subr.bf16.mxu1 %v332_v0 }
  0x13   :  { %191 = vmatpush1.bf16.msra.mxu0 %v317_v5  ;;  %300 = vmatpush1.bf16.msra.mxu1 %v317_v5 }
  0x14   :  { %192 = vmatprep.subr.bf16.mxu0 %v332_v0  ;;  %287 = vmatprep.subr.bf16.mxu1 %v332_v0 }
  0x17   :  { %193 = vmatpush1.bf16.msra.mxu0 %v318_v12  ;;  %301 = vmatpush1.bf16.msra.mxu1 %v318_v12 }
  0x18   :  { %194 = vmatprep.subr.bf16.mxu0 %v332_v0  ;;  %288 = vmatprep.subr.bf16.mxu1 %v332_v0 }
  0x1b   :  { %195 = vmatpush1.bf16.msra.mxu0 %v319_v15  ;;  %302 = vmatpush1.bf16.msra.mxu1 %v319_v15 }
  0x1c   :  { %196 = vmatprep.subr.bf16.mxu0 %v332_v0  ;;  %289 = vmatprep.subr.bf16.mxu1 %v332_v0 }
  0x1f   :  { %197 = vmatpush1.bf16.msra.mxu0 %v320_v17  ;;  %303 = vmatpush1.bf16.msra.mxu1 %v320_v17 }
  0x20   :  { %198 = vmatprep.subr.bf16.mxu0 %v332_v0  ;;  %290 = vmatprep.subr.bf16.mxu1 %v332_v0 }
  0x23   :  { %199 = vmatpush1.bf16.msra.mxu0 %v321_v18  ;;  %304 = vmatpush1.bf16.msra.mxu1 %v321_v18 }
  0x24   :  { %200 = vmatprep.subr.bf16.mxu0 %v332_v0  ;;  %291 = vmatprep.subr.bf16.mxu1 %v332_v0 }
  0x27   :  { %201 = vmatpush1.bf16.msra.mxu0 %v322_v19  ;;  %305 = vmatpush1.bf16.msra.mxu1 %v322_v19 }
  0x28   :  { %202 = vmatprep.subr.bf16.mxu0 %v332_v0  ;;  %292 = vmatprep.subr.bf16.mxu1 %v332_v0 }
  0x2b   :  { %203 = vmatpush1.bf16.msra.mxu0 %v323_v20  ;;  %306 = vmatpush1.bf16.msra.mxu1 %v323_v20 }
  0x2c   :  { %204 = vmatprep.subr.bf16.mxu0 %v332_v0  ;;  %293 = vmatprep.subr.bf16.mxu1 %v332_v0 }
  0x2f   :  { %205 = vmatpush1.bf16.msra.mxu0 %v324_v21  ;;  %307 = vmatpush1.bf16.msra.mxu1 %v324_v21 }
  0x30   :  { %206 = vmatprep.subr.bf16.mxu0 %v332_v0  ;;  %294 = vmatprep.subr.bf16.mxu1 %v332_v0 }
  0x33   :  { %207 = vmatpush1.bf16.msra.mxu0 %v325_v22  ;;  %308 = vmatpush1.bf16.msra.mxu1 %v325_v22 }
  0x34   :  { %208 = vmatprep.subr.bf16.mxu0 %v332_v0  ;;  %295 = vmatprep.subr.bf16.mxu1 %v332_v0 }
  0x37   :  { %209 = vmatpush1.bf16.msra.mxu0 %v180_v24  ;;  %309 = vmatpush1.bf16.msra.mxu1 %v180_v24 }
  0x3a   :  { %215 = vmatmul.mubr.bf16.vlgmr.msra.gmra.mrb[0].mxu0 %v327_v25  ;;  %223 = vmatmul.mubr.bf16.vlgmr.msra.gmra.mrb[0].mxu1 %v264_v26 }
  0x84   :  { %v70_v27 = vpop.permute.xlu1 %69 }
  0x85   :  { %v60_v28 = vpop.permute.xlu0 %59  ;;  %v74_v34 = vmul.f32 %v70_v27, %v56_v30 }
  0x86   :  { %v72_v35 = vmul.f32 %v60_v28, %v54_v31 }
  0x88   :  { %v236_v29 = vpop.permute.xlu1 %235 }
  0x89   :  { %v65_v32 = vpop.permute.xlu0 %64 }
  0x8a   :  { %v73_v39 = vmul.f32 %v65_v32, %v55_v33 }
  0x8c   :  { %v246_v36 = vpop.permute.xlu1 %245 }
  0x8d   :  { %v241_v51 = vpop.permute.xlu0 %240 }
 0x10d   :  { %v216_v37 = vpop.f32.mrb[0].mxu0  ;;  %v224_v38 = vpop.f32.mrb[0].mxu1 }
 0x10e   :  { %v217_v40 = vadd.f32 %v216_v37, %v72_v35  ;;  %v225_v41 = vadd.f32 %v224_v38, %v74_v34  ;;  %v218_v42 = vpop.f32.mrb[1].mxu0  ;;  %v226_v43 = vpop.f32.mrb[1].mxu1 }
 0x10f   :  { %v219_v44 = vpop.f32.mrb[2].mxu0  ;;  %v227_v45 = vpop.f32.mrb[2].mxu1 }
 0x110   :  { %v248_v46 = vadd.f32 %v236_v29, %v217_v40  ;;  %v250_v47 = vadd.f32 %v246_v36, %v225_v41  ;;  %v220_v48 = vadd.f32 %v219_v44, %v73_v39  ;;  %v221_v49 = vpop.f32.mrb[3].mxu0  ;;  %v228_v50 = vpop.f32.mrb[3].mxu1 }
 0x112   :  { %v251_v52 = vmax.f32 %v248_v46, 0.0  ;;  %v253_v53 = vmax.f32 %v250_v47, 0.0  ;;  %v249_v54 = vadd.f32 %v241_v51, %v220_v48 }
 0x114   :  { %255 = vst.msk [vmem:[%s493_s5] sm:$0xff] %vm254_vm2, %v251_v52  ;;  %257 = vst.msk [vmem:[%s493_s5 + $0x10] sm:$0xff] %vm254_vm2, %v253_v53  ;;  %v252_v55 = vmax.f32 %v249_v54, 0.0 }
 0x116   :  { %256 = vst.msk [vmem:[%s493_s5 + $0x8] sm:$0xff] %vm254_vm2, %v252_v55 }

// kernel: dcrn_forward.8
= control target key start
LH: loop header
LB: loop body
LE: loop exit
PB: predicated region body
PF: predicated region fallthrough
CT: control target
= control target key end

     0   :  { %s466_s12 = smov 0   ;;  %s468_s13 = smov 0   ;;  %s520_s0 = inlined_call_operand.vmem [shape: f32[40,50], index: 0, kind: input, shape index: {}]   ;;  %s521_s1 = inlined_call_operand.vmem [shape: bf16[24,8], index: 1, kind: input, shape index: {}]   ;;  %s522_s2 = inlined_call_operand.vmem [shape: f32[24,1], index: 2, kind: input, shape index: {}]   ;;  %s523_s3 = inlined_call_operand.vmem [shape: f32[120,50], index: 3, kind: output, shape index: {}]  }
   0x1   :  { %s470_s14 = smov 0  }
   0x2 LB: > { %s22_s15 = sadd.s32 1, %s439_s13  ;;  %p373_p0 = scmp.ge.s32.totalorder %s443_s14, 1  ;;  %s443_s14 = sphi %s470_s14, %s13_s14   ;;  %s439_s13 = sphi %s468_s13, %s525_s13   ;;  %s435_s12 = sphi %s466_s12, %s524_s12  }
   0x3   : > { %p23_p1 = scmp.ge.s32.totalorder %s22_s15, 5  ;;  %p150_p2 = scmp.lt.s32.totalorder %s443_s14, 6 }
   0x5   : > { %s527_s15 = smov (%p23_p1, %s22_s15), 0  ;;  %p151_p3 = pnand %p373_p0, %p150_p2 }
   0x6   : > { %s375_s16 = sshll.u32 (!%p151_p3), %s435_s12, 3  ;;  %v419_v0 = vld [vmem:[%s521_s1] sm:$0xff] (!%p151_p3)   ;;  %vm223_vm0 = vcmask (!%p151_p3), 64512   ;;  %vm230_vm1 = vcmask (!%p151_p3), 1043456   ;;  %v445_v4 = vmov (!%p151_p3), 0   ;;  %v199_v5 = vld [vmem:[%s522_s2 + $0x10] sm:$0xff] (!%p151_p3) }
   0x7   : > { %154 = sbr.rel (%p151_p3) target bundleno = 235 (0xeb), region = 32  ;;  %s191_s19 = scalar_lea.vmem (!%p151_p3), %s520_s0, %s375_s16  ;;  %v197_v2 = vld [vmem:[%s522_s2] sm:$0xff] (!%p151_p3)  ;;  %387 = vmatprep.mubr.msk.bf16.mxu0 (!%p151_p3), %vm223_vm0, %v419_v0  ;;  %417 = vset.pattern.permute.xlu0 (!%p151_p3), %v445_v4  ;;  %v420_v7 = vld [vmem:[%s521_s1 + $0x8] ss:$0 sps:$4 sm:$0xff] (!%p151_p3)   ;;  %vm285_vm2 = vcmask (!%p151_p3), 408576  }
   0x8   : > { %v192_v1 = vld [vmem:[%s191_s19] sm:$0xff] (!%p151_p3)  ;;  %202 = vperm.xlu0 (!%p151_p3), %417, %v197_v2   ;;  %418 = vset.pattern.permute.xlu1 (!%p151_p3), %v445_v4  ;;  %v198_v8 = vld [vmem:[%s522_s2 + $0x8] sm:$0xff] (!%p151_p3)  ;;  %s180_s30 = smul.u32 (!%p151_p3), 3, %s435_s12 }
   0x9   : > { %v193_v3 = vpack.c.bf16 (!%p151_p3), %v192_v1, %v192_v1  ;;  %212 = vperm.xlu1 (!%p151_p3), %418, %v199_v5  }
   0xa   : > { %p181_p4 = scmp.lt.s32.totalorder (!%p151_p3), %s180_s30, 14 }
   0xb   : > { %391 = vmatprep.subr.msk.bf16.mxu0 (!%p151_p3), %vm230_vm1, %v193_v3  ;;  %v232_v6 = vsel (!%p151_p3), %vm230_vm1, %v193_v3, 0 }
   0xc   : > { %386 = vmatpush3.bf16.msra.mxu0 (!%p151_p3), %v232_v6  ;;  %207 = vperm.xlu0 (!%p151_p3), %417, %v198_v8  }
   0xe   : > { %s529_s30 = smov (!%p181_p4, %s180_s30), 14 }
   0xf   : > { %388 = vmatmul.mubr.msk.bf16.vlgmr.msra.gmra.mrb[0].mxu0 %vm223_vm0, %v420_v7  ;;  %s374_s4 = sshll.u32 %s529_s30, 3 }
  0x10   : > { %s187_s7 = scalar_lea.vmem %s523_s3, %s374_s4 }
  0x87   : > { %v203_v9 = vpop.permute.xlu0 %202 }
  0x88   : > { %v213_v10 = vpop.permute.xlu1 %212 }
  0x8b   : > { %v208_v16 = vpop.permute.xlu0 %207 }
  0xe2   : > { %v389_v11 = vpop.f32.mrb[0].mxu0 }
  0xe3   : > { %v277_v12 = vadd.f32 %v389_v11, %v213_v10  ;;  %v268_v13 = vpop.f32.mrb[1].mxu0 }
  0xe4   : > { %v269_v14 = vadd.f32 %v268_v13, %v203_v9  ;;  %v390_v15 = vpop.f32.mrb[2].mxu0 }
  0xe5   : > { %v284_v17 = vmax.f32 %v277_v12, 0.0  ;;  %v271_v18 = vpop.f32.mrb[3].mxu0 }
  0xe6   : > { %v282_v19 = vmax.f32 %v269_v14, 0.0  ;;  %v272_v20 = vadd.f32 %v271_v18, %v208_v16 }
  0xe7   : > { %288 = vst.msk [vmem:[%s187_s7 + $0x10] sm:$0xff] %vm285_vm2, %v284_v17 }
  0xe8   : > { %286 = vst.msk [vmem:[%s187_s7] sm:$0xff] %vm285_vm2, %v282_v19  ;;  %v283_v21 = vmax.f32 %v272_v20, 0.0 }
  0xea   : > { %287 = vst.msk [vmem:[%s187_s7 + $0x8] sm:$0xff] %vm285_vm2, %v283_v21 }
  0xeb PF: > { %s13_s14 = sadd.s32 1, %s443_s14   ;;  %s524_s12 = smov %s439_s13 }
  0xec   : > { %p10_p5 = scmp.ge.s32.totalorder %s13_s14, 7   ;;  %s525_s13 = smov %s527_s15 }
  0xee   :  { %12 = sbr.rel (!%p10_p5) target bundleno = 2 (0x2), region = 63 }

// kernel: dcrn_forward.9
= control target key start
LH: loop header
LB: loop body
LE: loop exit
PB: predicated region body
PF: predicated region fallthrough
CT: control target
= control target key end

     0   :  { %s519_s12 = smov 0   ;;  %s521_s13 = smov 0   ;;  %s629_s0 = inlined_call_operand.vmem [shape: f32[264,50], index: 0, kind: input, shape index: {}]   ;;  %s630_s1 = inlined_call_operand.vmem [shape: bf16[24,168], index: 1, kind: input, shape index: {}]   ;;  %s631_s2 = inlined_call_operand.vmem [shape: f32[24,1], index: 2, kind: input, shape index: {}]   ;;  %s632_s3 = inlined_call_operand.vmem [shape: f32[120,50], index: 3, kind: output, shape index: {}]  }
   0x1   :  { %s523_s14 = smov 0  }
   0x2 LB: > { %s22_s15 = sadd.s32 1, %s492_s13  ;;  %p410_p0 = scmp.ge.s32.totalorder %s496_s14, 1  ;;  %s496_s14 = sphi %s523_s14, %s13_s14   ;;  %s492_s13 = sphi %s521_s13, %s634_s13   ;;  %s488_s12 = sphi %s519_s12, %s633_s12  }
   0x3   : > { %p23_p1 = scmp.ge.s32.totalorder %s22_s15, 5  ;;  %p150_p2 = scmp.lt.s32.totalorder %s496_s14, 6 }
   0x5   : > { %s636_s15 = smov (%p23_p1, %s22_s15), 0  ;;  %p151_p3 = pnand %p410_p0, %p150_p2 }
   0x6   : > { %s190_s16 = smul.u32 (!%p151_p3), 24, %s488_s12  ;;  %vm260_vm0 = vcmask (!%p151_p3), 326656   ;;  %v498_v0 = vmov (!%p151_p3), 0   ;;  %v471_v1 = vld [vmem:[%s630_s1 + $0x4] ss:$8 sps:$4 sm:$0xff] (!%p151_p3)   ;;  %v548_v2 = vld [vmem:[%s630_s1 + $0x10] sm:$0xff] (!%p151_p3) }
   0x7   : > { %154 = sbr.rel (%p151_p3) target bundleno = 274 (0x112), region = 32  ;;  %271 = vmatprep.subr.bf16.mxu0 (!%p151_p3), %v498_v0  ;;  %420 = vmatprep.subr.bf16.mxu1 (!%p151_p3), %v498_v0  ;;  %v415_v3 = vcombine.high (!%p151_p3), %v548_v2, %v548_v2  ;;  %v227_v4 = vld [vmem:[%s631_s2] sm:$0xff] (!%p151_p3)  ;;  %v229_v5 = vld [vmem:[%s631_s2 + $0x10] sm:$0xff] (!%p151_p3)  ;;  %v228_v11 = vld [vmem:[%s631_s2 + $0x8] sm:$0xff] (!%p151_p3)  ;;  %vm267_vm1 = vcmask (!%p151_p3), 1043456   ;;  %v414_v41 = vcombine.low (!%p151_p3), %v548_v2, %v548_v2  ;;  %vm322_vm2 = vcmask (!%p151_p3), 408576  }
   0x8   : > { %s553_s23 = scalar_lea.vmem (!%p151_p3), %s629_s0, %s190_s16  ;;  %467 = vset.pattern.permute.xlu0 (!%p151_p3), %v498_v0  ;;  %468 = vset.pattern.permute.xlu1 (!%p151_p3), %v498_v0  ;;  %v469_v40 = vld [vmem:[%s630_s1] ss:$8 sps:$4 sm:$0xff] (!%p151_p3)   ;;  %s180_s5 = smul.u32 (!%p151_p3), 3, %s488_s12 }
   0x9   : > { %v192_v6 = vld [vmem:[%s553_s23] sm:$0xff] (!%p151_p3)  ;;  %v193_v7 = vld [vmem:[%s553_s23 + $0x8] sm:$0xff] (!%p151_p3)  ;;  %v194_v8 = vld [vmem:[%s553_s23 + $0x10] sm:$0xff] (!%p151_p3)  ;;  %416 = vmatprep.mubr.msk.bf16.mxu0 (!%p151_p3), %vm260_vm0, %v471_v1  ;;  %232 = vperm.xlu0 (!%p151_p3), %467, %v227_v4  }
   0xa   : > { %v213_v9 = vpack.c.bf16 (!%p151_p3), %v193_v7, %v192_v6  ;;  %v195_v10 = vld [vmem:[%s553_s23 + $0x18] sm:$0xff] (!%p151_p3)  ;;  %417 = vmatprep.mubr.msk.bf16.mxu1 (!%p151_p3), %vm260_vm0, %v415_v3  ;;  %242 = vperm.xlu1 (!%p151_p3), %468, %v229_v5   ;;  %v196_v13 = vld [vmem:[%s553_s23 + $0x20] sm:$0xff] (!%p151_p3)  ;;  %v197_v14 = vld [vmem:[%s553_s23 + $0x28] sm:$0xff] (!%p151_p3)  ;;  %p181_p4 = scmp.lt.s32.totalorder (!%p151_p3), %s180_s5, 14 }
   0xb   : > { %v214_v12 = vpack.c.bf16 (!%p151_p3), %v195_v10, %v194_v8  ;;  %v215_v15 = vpack.c.bf16 (!%p151_p3), %v197_v14, %v196_v13  ;;  %v198_v16 = vld [vmem:[%s553_s23 + $0x30] sm:$0xff] (!%p151_p3)  ;;  %v199_v17 = vld [vmem:[%s553_s23 + $0x38] sm:$0xff] (!%p151_p3)  ;;  %v200_v19 = vld [vmem:[%s553_s23 + $0x40] sm:$0xff] (!%p151_p3) }
   0xc   : > { %272 = vmatpush1.bf16.msra.mxu0 (!%p151_p3), %v213_v9  ;;  %431 = vmatpush1.bf16.msra.mxu1 (!%p151_p3), %v213_v9  ;;  %v216_v18 = vpack.c.bf16 (!%p151_p3), %v199_v17, %v198_v16  ;;  %v201_v20 = vld [vmem:[%s553_s23 + $0x48] sm:$0xff] (!%p151_p3)  ;;  %v202_v22 = vld [vmem:[%s553_s23 + $0x50] sm:$0xff] (!%p151_p3)  ;;  %v203_v23 = vld [vmem:[%s553_s23 + $0x58] sm:$0xff] (!%p151_p3) }
   0xd   : > { %273 = vmatprep.subr.bf16.mxu0 (!%p151_p3), %v498_v0  ;;  %421 = vmatprep.subr.bf16.mxu1 (!%p151_p3), %v498_v0  ;;  %v217_v21 = vpack.c.bf16 (!%p151_p3), %v201_v20, %v200_v19  ;;  %v218_v24 = vpack.c.bf16 (!%p151_p3), %v203_v23, %v202_v22  ;;  %v204_v25 = vld [vmem:[%s553_s23 + $0x60] sm:$0xff] (!%p151_p3)  ;;  %v205_v26 = vld [vmem:[%s553_s23 + $0x68] sm:$0xff] (!%p151_p3)  ;;  %v206_v28 = vld [vmem:[%s553_s23 + $0x70] sm:$0xff] (!%p151_p3) }
   0xe   : > { %237 = vperm.xlu0 %467, %v228_v11   ;;  %v219_v27 = vpack.c.bf16 %v205_v26, %v204_v25  ;;  %v207_v29 = vld [vmem:[%s553_s23 + $0x78] sm:$0xff]  ;;  %v208_v31 = vld [vmem:[%s553_s23 + $0x80] sm:$0xff]  ;;  %v209_v32 = vld [vmem:[%s553_s23 + $0x88] sm:$0xff]  ;;  %s638_s5 = smov (!%p181_p4, %s180_s5), 14 }
   0xf   : > { %v220_v30 = vpack.c.bf16 %v207_v29, %v206_v28  ;;  %v221_v33 = vpack.c.bf16 %v209_v32, %v208_v31  ;;  %v210_v34 = vld [vmem:[%s553_s23 + $0x90] sm:$0xff]  ;;  %v211_v35 = vld [vmem:[%s553_s23 + $0x98] sm:$0xff]  ;;  %v212_v36 = vld [vmem:[%s553_s23 + $0xa0] sm:$0xff]  ;;  %s411_s6 = sshll.u32 %s638_s5, 3 }
  0x10   : > { %274 = vmatpush1.bf16.msra.mxu0 %v214_v12  ;;  %432 = vmatpush1.bf16.msra.mxu1 %v214_v12  ;;  %v222_v37 = vpack.c.bf16 %v211_v35, %v210_v34  ;;  %v223_v38 = vpack.c.bf16 %v212_v36, %v212_v36  ;;  %s187_s9 = scalar_lea.vmem %s632_s3, %s411_s6 }
  0x11   : > { %275 = vmatprep.subr.bf16.mxu0 %v498_v0  ;;  %422 = vmatprep.subr.bf16.mxu1 %v498_v0 }
  0x12   : > { %v269_v39 = vsel %vm267_vm1, %v223_v38, 0 }
  0x14   : > { %276 = vmatpush1.bf16.msra.mxu0 %v215_v15  ;;  %433 = vmatpush1.bf16.msra.mxu1 %v215_v15 }
  0x15   : > { %277 = vmatprep.subr.bf16.mxu0 %v498_v0  ;;  %423 = vmatprep.subr.bf16.mxu1 %v498_v0 }
  0x18   : > { %278 = vmatpush1.bf16.msra.mxu0 %v216_v18  ;;  %434 = vmatpush1.bf16.msra.mxu1 %v216_v18 }
  0x19   : > { %279 = vmatprep.subr.bf16.mxu0 %v498_v0  ;;  %424 = vmatprep.subr.bf16.mxu1 %v498_v0 }
  0x1c   : > { %280 = vmatpush1.bf16.msra.mxu0 %v217_v21  ;;  %435 = vmatpush1.bf16.msra.mxu1 %v217_v21 }
  0x1d   : > { %281 = vmatprep.subr.bf16.mxu0 %v498_v0  ;;  %425 = vmatprep.subr.bf16.mxu1 %v498_v0 }
  0x20   : > { %282 = vmatpush1.bf16.msra.mxu0 %v218_v24  ;;  %436 = vmatpush1.bf16.msra.mxu1 %v218_v24 }
  0x21   : > { %283 = vmatprep.subr.bf16.mxu0 %v498_v0  ;;  %426 = vmatprep.subr.bf16.mxu1 %v498_v0 }
  0x24   : > { %284 = vmatpush1.bf16.msra.mxu0 %v219_v27  ;;  %437 = vmatpush1.bf16.msra.mxu1 %v219_v27 }
  0x25   : > { %285 = vmatprep.subr.bf16.mxu0 %v498_v0  ;;  %427 = vmatprep.subr.bf16.mxu1 %v498_v0 }
  0x28   : > { %286 = vmatpush1.bf16.msra.mxu0 %v220_v30  ;;  %438 = vmatpush1.bf16.msra.mxu1 %v220_v30 }
  0x29   : > { %287 = vmatprep.subr.bf16.mxu0 %v498_v0  ;;  %428 = vmatprep.subr.bf16.mxu1 %v498_v0 }
  0x2c   : > { %288 = vmatpush1.bf16.msra.mxu0 %v221_v33  ;;  %439 = vmatpush1.bf16.msra.mxu1 %v221_v33 }
  0x2d   : > { %289 = vmatprep.subr.bf16.mxu0 %v498_v0  ;;  %429 = vmatprep.subr.bf16.mxu1 %v498_v0 }
  0x30   : > { %290 = vmatpush1.bf16.msra.mxu0 %v222_v37  ;;  %440 = vmatpush1.bf16.msra.mxu1 %v222_v37 }
  0x31   : > { %291 = vmatprep.subr.bf16.mxu0 %v498_v0  ;;  %430 = vmatprep.subr.bf16.mxu1 %v498_v0 }
  0x34   : > { %292 = vmatpush1.bf16.msra.mxu0 %v269_v39  ;;  %441 = vmatpush1.bf16.msra.mxu1 %v269_v39 }
  0x37   : > { %304 = vmatmul.mubr.bf16.vlgmr.msra.gmra.mrb[0].mxu0 %v469_v40  ;;  %312 = vmatmul.mubr.bf16.vlgmr.msra.gmra.mrb[0].mxu1 %v414_v41 }
  0x88   : > { %v233_v42 = vpop.permute.xlu0 %232 }
  0x89   : > { %v243_v43 = vpop.permute.xlu1 %242 }
  0x8d   : > { %v238_v44 = vpop.permute.xlu0 %237 }
 0x10a   : > { %v305_v45 = vpop.f32.mrb[0].mxu0  ;;  %v313_v46 = vpop.f32.mrb[0].mxu1 }
 0x10b   : > { %v306_v47 = vadd.f32 %v305_v45, %v233_v42  ;;  %v307_v48 = vpop.f32.mrb[1].mxu0  ;;  %v315_v49 = vpop.f32.mrb[1].mxu1  ;;  %v314_v50 = vadd.f32 %v313_v46, %v243_v43 }
 0x10c   : > { %v308_v51 = vpop.f32.mrb[2].mxu0  ;;  %v316_v52 = vpop.f32.mrb[2].mxu1 }
 0x10d   : > { %v319_v53 = vmax.f32 %v306_v47, 0.0  ;;  %v321_v54 = vmax.f32 %v314_v50, 0.0  ;;  %v309_v55 = vadd.f32 %v308_v51, %v238_v44  ;;  %v310_v56 = vpop.f32.mrb[3].mxu0  ;;  %v317_v57 = vpop.f32.mrb[3].mxu1 }
 0x10f   : > { %323 = vst.msk [vmem:[%s187_s9] sm:$0xff] %vm322_vm2, %v319_v53  ;;  %325 = vst.msk [vmem:[%s187_s9 + $0x10] sm:$0xff] %vm322_vm2, %v321_v54  ;;  %v320_v58 = vmax.f32 %v309_v55, 0.0 }
 0x111   : > { %324 = vst.msk [vmem:[%s187_s9 + $0x8] sm:$0xff] %vm322_vm2, %v320_v58 }
 0x112 PF: > { %s13_s14 = sadd.s32 1, %s496_s14   ;;  %s633_s12 = smov %s492_s13 }
 0x113   : > { %p10_p5 = scmp.ge.s32.totalorder %s13_s14, 7   ;;  %s634_s13 = smov %s636_s15 }
 0x115   :  { %12 = sbr.rel (!%p10_p5) target bundleno = 2 (0x2), region = 63 }

// kernel: dcrn_forward.11
= control target key start
LH: loop header
LB: loop body
LE: loop exit
PB: predicated region body
PF: predicated region fallthrough
CT: control target
= control target key end

     0   :  { %v499_v1 = vmov 0   ;;  %vm227_vm0 = vcmask 982016   ;;  %vm252_vm1 = vcmask 1043456   ;;  %vm369_vm2 = vcmask 408576   ;;  %s691_s0 = inlined_call_operand.vmem [shape: bf16[120,50], index: 0, kind: input, shape index: {}]   ;;  %s692_s1 = inlined_call_operand.vmem [shape: bf16[128,120], index: 1, kind: input, shape index: {}]   ;;  %s693_s2 = inlined_call_operand.vmem [shape: f32[128,1], index: 2, kind: input, shape index: {}]   ;;  %s694_s3 = inlined_call_operand.vmem [shape: f32[128,50], index: 3, kind: output, shape index: {}]  }
   0x1   :  { %v483_v0 = vld [vmem:[%s691_s0] sm:$0xff]   ;;  %482 = vset.pattern.permute.xlu1 %v499_v1  ;;  %481 = vset.pattern.permute.xlu0 %v499_v1  ;;  %v484_v2 = vld [vmem:[%s691_s0 + $0x8] sm:$0xff]   ;;  %v485_v3 = vld [vmem:[%s691_s0 + $0x10] sm:$0xff]  }
   0x2   :  { %430 = vmatprep.subr.bf16.mxu0 %v483_v0  ;;  %462 = vmatprep.subr.bf16.mxu1 %v483_v0  ;;  %v486_v4 = vld [vmem:[%s691_s0 + $0x18] sm:$0xff]   ;;  %v491_v5 = vld [vmem:[%s692_s1] sm:$0xff]   ;;  %v48_v8 = vld [vmem:[%s693_s2 + $0x10] sm:$0xff] }
   0x3   :  { %431 = vmatpush3.bf16.msra.mxu0 %v483_v0  ;;  %470 = vmatpush3.bf16.msra.mxu1 %v483_v0  ;;  %v492_v6 = vld [vmem:[%s692_s1 + $0x20] sm:$0xff]   ;;  %v488_v9 = vld [vmem:[%s691_s0 + $0x28] sm:$0xff]   ;;  %v49_v11 = vld [vmem:[%s693_s2 + $0x18] sm:$0xff] }
   0x4   :  { %432 = vmatprep.subr.bf16.mxu0 %v484_v2  ;;  %463 = vmatprep.subr.bf16.mxu1 %v484_v2  ;;  %v487_v7 = vld [vmem:[%s691_s0 + $0x20] sm:$0xff]   ;;  %v47_v12 = vld [vmem:[%s693_s2 + $0x8] sm:$0xff]  ;;  %v489_v13 = vld [vmem:[%s691_s0 + $0x30] sm:$0xff]  }
   0x5   :  { %446 = vmatprep.mubr.msk.bf16.mxu0 %vm227_vm0, %v491_v5  ;;  %454 = vmatprep.mubr.msk.bf16.mxu1 %vm227_vm0, %v492_v6  ;;  %v46_v10 = vld [vmem:[%s693_s2] sm:$0xff]  ;;  %v51_v14 = vld [vmem:[%s693_s2 + $0x28] sm:$0xff]  ;;  %v490_v16 = vld [vmem:[%s691_s0 + $0x38] ss:$0 sps:$4 sm:$0xff]  }
   0x6   :  { %74 = vperm.xlu1 %482, %v48_v8   ;;  %64 = vperm.xlu0 %481, %v46_v10   ;;  %v50_v15 = vld [vmem:[%s693_s2 + $0x20] sm:$0xff]  ;;  %v53_v17 = vld [vmem:[%s693_s2 + $0x38] sm:$0xff]  ;;  %v52_v18 = vld [vmem:[%s693_s2 + $0x30] sm:$0xff]  ;;  %v254_v19 = vsel %vm252_vm1, %v490_v16, 0 }
   0x7   :  { %433 = vmatpush3.bf16.msra.mxu0 %v484_v2  ;;  %471 = vmatpush3.bf16.msra.mxu1 %v484_v2  ;;  %v493_v20 = vld [vmem:[%s692_s1 + $0x8] sm:$0xff]   ;;  %v54_v23 = vld [vmem:[%s693_s2 + $0x40] sm:$0xff]  ;;  %v495_v24 = vld [vmem:[%s692_s1 + $0x10] sm:$0xff]  }
   0x8   :  { %434 = vmatprep.subr.bf16.mxu0 %v485_v3  ;;  %464 = vmatprep.subr.bf16.mxu1 %v485_v3  ;;  %v494_v21 = vld [vmem:[%s692_s1 + $0x28] sm:$0xff]   ;;  %v496_v25 = vld [vmem:[%s692_s1 + $0x30] sm:$0xff]   ;;  %v57_v26 = vld [vmem:[%s693_s2 + $0x58] sm:$0xff] }
   0x9   :  { %v55_v22 = vld [vmem:[%s693_s2 + $0x48] sm:$0xff]  ;;  %v56_v27 = vld [vmem:[%s693_s2 + $0x50] sm:$0xff]  ;;  %v497_v28 = vld [vmem:[%s692_s1 + $0x18] sm:$0xff]  }
   0xa   :  { %79 = vperm.xlu1 %482, %v49_v11   ;;  %69 = vperm.xlu0 %481, %v47_v12   ;;  %v498_v29 = vld [vmem:[%s692_s1 + $0x38] sm:$0xff]   ;;  %v59_v30 = vld [vmem:[%s693_s2 + $0x68] sm:$0xff]  ;;  %v58_v31 = vld [vmem:[%s693_s2 + $0x60] sm:$0xff] }
   0xb   :  { %435 = vmatpush3.bf16.msra.mxu0 %v485_v3  ;;  %472 = vmatpush3.bf16.msra.mxu1 %v485_v3  ;;  %v61_v32 = vld [vmem:[%s693_s2 + $0x78] sm:$0xff]  ;;  %v60_v33 = vld [vmem:[%s693_s2 + $0x70] sm:$0xff] }
   0xc   :  { %436 = vmatprep.subr.bf16.mxu0 %v486_v4  ;;  %465 = vmatprep.subr.bf16.mxu1 %v486_v4 }
   0xe   :  { %89 = vperm.xlu1 %482, %v51_v14   ;;  %84 = vperm.xlu0 %481, %v50_v15  }
   0xf   :  { %437 = vmatpush3.bf16.msra.mxu0 %v486_v4  ;;  %473 = vmatpush3.bf16.msra.mxu1 %v486_v4 }
  0x10   :  { %438 = vmatprep.subr.bf16.mxu0 %v487_v7  ;;  %466 = vmatprep.subr.bf16.mxu1 %v487_v7 }
  0x12   :  { %99 = vperm.xlu1 %482, %v53_v17   ;;  %94 = vperm.xlu0 %481, %v52_v18  }
  0x13   :  { %439 = vmatpush3.bf16.msra.mxu0 %v487_v7  ;;  %474 = vmatpush3.bf16.msra.mxu1 %v487_v7 }
  0x14   :  { %440 = vmatprep.subr.bf16.mxu0 %v488_v9  ;;  %467 = vmatprep.subr.bf16.mxu1 %v488_v9 }
  0x16   :  { %109 = vperm.xlu1 %482, %v55_v22   ;;  %104 = vperm.xlu0 %481, %v54_v23  }
  0x17   :  { %441 = vmatpush3.bf16.msra.mxu0 %v488_v9  ;;  %475 = vmatpush3.bf16.msra.mxu1 %v488_v9 }
  0x18   :  { %442 = vmatprep.subr.bf16.mxu0 %v489_v13  ;;  %468 = vmatprep.subr.bf16.mxu1 %v489_v13 }
  0x1a   :  { %119 = vperm.xlu1 %482, %v57_v26   ;;  %114 = vperm.xlu0 %481, %v56_v27  }
  0x1b   :  { %443 = vmatpush3.bf16.msra.mxu0 %v489_v13  ;;  %476 = vmatpush3.bf16.msra.mxu1 %v489_v13 }
  0x1c   :  { %478 = vmatprep.subr.msk.bf16.mxu0 %vm252_vm1, %v490_v16  ;;  %479 = vmatprep.subr.msk.bf16.mxu1 %vm252_vm1, %v490_v16 }
  0x1e   :  { %129 = vperm.xlu1 %482, %v59_v30   ;;  %124 = vperm.xlu0 %481, %v58_v31  }
  0x1f   :  { %445 = vmatpush3.bf16.msra.mxu0 %v254_v19  ;;  %477 = vmatpush3.bf16.msra.mxu1 %v254_v19 }
  0x22   :  { %447 = vmatmul.mubr.msk.bf16.vlgmr.msra.gmra.mrb[0].mxu0 %vm227_vm0, %v493_v20  ;;  %455 = vmatmul.mubr.msk.bf16.vlgmr.msra.gmra.mrb[0].mxu1 %vm227_vm0, %v494_v21 }
  0x23   :  { %450 = vmatprep.mubr.msk.bf16.mxu0 %vm227_vm0, %v495_v24  ;;  %458 = vmatprep.mubr.msk.bf16.mxu1 %vm227_vm0, %v496_v25 }
  0x24   :  { %139 = vperm.xlu1 %482, %v61_v32   ;;  %134 = vperm.xlu0 %481, %v60_v33  }
  0x2a   :  { %451 = vmatmul.mubr.msk.bf16.gmra.mrb[4].mxu0 %vm227_vm0, %v497_v28  ;;  %459 = vmatmul.mubr.msk.bf16.gmra.mrb[4].mxu1 %vm227_vm0, %v498_v29 }
  0x85   :  { %v75_v34 = vpop.permute.xlu1 %74  ;;  %v65_v35 = vpop.permute.xlu0 %64 }
  0x89   :  { %v80_v36 = vpop.permute.xlu1 %79  ;;  %v70_v37 = vpop.permute.xlu0 %69 }
  0x8d   :  { %v624_v38 = vpop.permute.xlu1 %89  ;;  %v85_v39 = vpop.permute.xlu0 %84 }
  0x91   :  { %v100_v40 = vpop.permute.xlu1 %99  ;;  %v95_v41 = vpop.permute.xlu0 %94 }
  0x95   :  { %v110_v42 = vpop.permute.xlu1 %109  ;;  %v105_v43 = vpop.permute.xlu0 %104 }
  0x99   :  { %v120_v44 = vpop.permute.xlu1 %119  ;;  %v115_v45 = vpop.permute.xlu0 %114 }
  0x9d   :  { %v130_v46 = vpop.permute.xlu1 %129  ;;  %v125_v47 = vpop.permute.xlu0 %124 }
  0xa3   :  { %v140_v8 = vpop.permute.xlu1 %139  ;;  %v135_v9 = vpop.permute.xlu0 %134 }
  0xf5   :  { %v448_v48 = vpop.f32.mrb[0].mxu0  ;;  %v456_v49 = vpop.f32.mrb[0].mxu1 }
  0xf6   :  { %v299_v50 = vadd.f32 %v448_v48, %v75_v34  ;;  %v331_v51 = vadd.f32 %v456_v49, %v115_v45  ;;  %v290_v52 = vpop.f32.mrb[1].mxu0  ;;  %v322_v53 = vpop.f32.mrb[1].mxu1 }
  0xf7   :  { %v291_v54 = vadd.f32 %v290_v52, %v65_v35  ;;  %v323_v55 = vadd.f32 %v322_v53, %v105_v43  ;;  %v449_v56 = vpop.f32.mrb[2].mxu0  ;;  %v457_v57 = vpop.f32.mrb[2].mxu1 }
  0xf8   :  { %v355_v58 = vmax.f32 %v299_v50, 0.0  ;;  %v363_v59 = vmax.f32 %v331_v51, 0.0  ;;  %v302_v60 = vadd.f32 %v449_v56, %v80_v36  ;;  %v334_v61 = vadd.f32 %v457_v57, %v120_v44  ;;  %v293_v62 = vpop.f32.mrb[3].mxu0  ;;  %v325_v63 = vpop.f32.mrb[3].mxu1 }
  0xf9   :  { %v353_v0 = vmax.f32 %v291_v54, 0.0  ;;  %v361_v1 = vmax.f32 %v323_v55, 0.0  ;;  %v294_v2 = vadd.f32 %v293_v62, %v70_v37  ;;  %v326_v3 = vadd.f32 %v325_v63, %v110_v42 }
  0xfa   :  { %372 = vst.msk [vmem:[%s694_s3 + $0x10] sm:$0xff] %vm369_vm2, %v355_v58  ;;  %380 = vst.msk [vmem:[%s694_s3 + $0x50] sm:$0xff] %vm369_vm2, %v363_v59  ;;  %v356_v4 = vmax.f32 %v302_v60, 0.0  ;;  %v364_v5 = vmax.f32 %v334_v61, 0.0 }
  0xfb   :  { %370 = vst.msk [vmem:[%s694_s3] sm:$0xff] %vm369_vm2, %v353_v0  ;;  %378 = vst.msk [vmem:[%s694_s3 + $0x40] sm:$0xff] %vm369_vm2, %v361_v1  ;;  %v354_v6 = vmax.f32 %v294_v2, 0.0  ;;  %v362_v7 = vmax.f32 %v326_v3, 0.0 }
  0xfc   :  { %373 = vst.msk [vmem:[%s694_s3 + $0x18] sm:$0xff] %vm369_vm2, %v356_v4  ;;  %381 = vst.msk [vmem:[%s694_s3 + $0x58] sm:$0xff] %vm369_vm2, %v364_v5 }
  0xfd   :  { %371 = vst.msk [vmem:[%s694_s3 + $0x8] sm:$0xff] %vm369_vm2, %v354_v6  ;;  %379 = vst.msk [vmem:[%s694_s3 + $0x48] sm:$0xff] %vm369_vm2, %v362_v7  ;;  %v452_v10 = vpop.f32.mrb[4].mxu0  ;;  %v460_v11 = vpop.f32.mrb[4].mxu1 }
  0xfe   :  { %v315_v12 = vadd.f32 %v452_v10, %v95_v41  ;;  %v347_v13 = vadd.f32 %v460_v11, %v135_v9  ;;  %v306_v14 = vpop.f32.mrb[5].mxu0  ;;  %v338_v15 = vpop.f32.mrb[5].mxu1 }
  0xff   :  { %v307_v16 = vadd.f32 %v306_v14, %v85_v39  ;;  %v339_v17 = vadd.f32 %v338_v15, %v125_v47  ;;  %v453_v18 = vpop.f32.mrb[6].mxu0  ;;  %v461_v19 = vpop.f32.mrb[6].mxu1 }
 0x100   :  { %v359_v20 = vmax.f32 %v315_v12, 0.0  ;;  %v367_v21 = vmax.f32 %v347_v13, 0.0  ;;  %v318_v22 = vadd.f32 %v453_v18, %v100_v40  ;;  %v350_v23 = vadd.f32 %v461_v19, %v140_v8  ;;  %v309_v24 = vpop.f32.mrb[7].mxu0  ;;  %v341_v25 = vpop.f32.mrb[7].mxu1 }
 0x101   :  { %v357_v26 = vmax.f32 %v307_v16, 0.0  ;;  %v365_v27 = vmax.f32 %v339_v17, 0.0  ;;  %v310_v28 = vadd.f32 %v309_v24, %v624_v38  ;;  %v342_v29 = vadd.f32 %v341_v25, %v130_v46 }
 0x102   :  { %376 = vst.msk [vmem:[%s694_s3 + $0x30] sm:$0xff] %vm369_vm2, %v359_v20  ;;  %384 = vst.msk [vmem:[%s694_s3 + $0x70] sm:$0xff] %vm369_vm2, %v367_v21  ;;  %v360_v30 = vmax.f32 %v318_v22, 0.0  ;;  %v368_v31 = vmax.f32 %v350_v23, 0.0 }
 0x103   :  { %374 = vst.msk [vmem:[%s694_s3 + $0x20] sm:$0xff] %vm369_vm2, %v357_v26  ;;  %382 = vst.msk [vmem:[%s694_s3 + $0x60] sm:$0xff] %vm369_vm2, %v365_v27  ;;  %v358_v32 = vmax.f32 %v310_v28, 0.0  ;;  %v366_v33 = vmax.f32 %v342_v29, 0.0 }
 0x104   :  { %377 = vst.msk [vmem:[%s694_s3 + $0x38] sm:$0xff] %vm369_vm2, %v360_v30  ;;  %385 = vst.msk [vmem:[%s694_s3 + $0x78] sm:$0xff] %vm369_vm2, %v368_v31 }
 0x105   :  { %375 = vst.msk [vmem:[%s694_s3 + $0x28] sm:$0xff] %vm369_vm2, %v358_v32  ;;  %383 = vst.msk [vmem:[%s694_s3 + $0x68] sm:$0xff] %vm369_vm2, %v366_v33 }

// kernel: dcrn_forward.10
= control target key start
LH: loop header
LB: loop body
LE: loop exit
PB: predicated region body
PF: predicated region fallthrough
CT: control target
= control target key end

     0   :  { %s660_s18 = smov 0   ;;  %s662_s19 = smov 0   ;;  %s782_s0 = inlined_call_operand.vmem [shape: f32[264,50], index: 0, kind: input, shape index: {}]   ;;  %s783_s1 = inlined_call_operand.vmem [shape: bf16[24,168], index: 1, kind: input, shape index: {}]   ;;  %s784_s2 = inlined_call_operand.vmem [shape: f32[120,50], index: 2, kind: input, shape index: {}]   ;;  %s785_s3 = inlined_call_operand.vmem [shape: f32[24,1], index: 3, kind: input, shape index: {}]   ;;  %s786_s4 = inlined_call_operand.vmem [shape: f32[24,1], index: 4, kind: input, shape index: {}]   ;;  %s787_s5 = inlined_call_operand.vmem [shape: f32[120,50], index: 5, kind: output, shape index: {}]  }
   0x1   :  { %s664_s20 = smov 0  }
   0x2 LB: > { %s24_s21 = sadd.s32 1, %s623_s19  ;;  %p540_p0 = scmp.ge.s32.totalorder %s627_s20, 1  ;;  %s627_s20 = sphi %s664_s20, %s15_s20   ;;  %s623_s19 = sphi %s662_s19, %s789_s19   ;;  %s619_s18 = sphi %s660_s18, %s788_s18  }
   0x3   : > { %p25_p1 = scmp.ge.s32.totalorder %s24_s21, 5  ;;  %p216_p2 = scmp.lt.s32.totalorder %s627_s20, 6 }
   0x5   : > { %s791_s21 = smov (%p25_p1, %s24_s21), 0  ;;  %p217_p3 = pnand %p540_p0, %p216_p2 }
   0x6   : > { %s277_s22 = smul.u32 (!%p217_p3), 24, %s619_s18  ;;  %vm353_vm0 = vcmask (!%p217_p3), 326656   ;;  %v629_v0 = vmov (!%p217_p3), 0   ;;  %v602_v1 = vld [vmem:[%s783_s1 + $0x4] ss:$8 sps:$4 sm:$0xff] (!%p217_p3)   ;;  %v689_v2 = vld [vmem:[%s783_s1 + $0x10] sm:$0xff] (!%p217_p3) }
   0x7   : > { %220 = sbr.rel (%p217_p3) target bundleno = 276 (0x114), region = 40  ;;  %364 = vmatprep.subr.bf16.mxu0 (!%p217_p3), %v629_v0  ;;  %551 = vmatprep.subr.bf16.mxu1 (!%p217_p3), %v629_v0  ;;  %v546_v3 = vcombine.high (!%p217_p3), %v689_v2, %v689_v2  ;;  %v316_v4 = vld [vmem:[%s785_s3 + $0x10] sm:$0xff] (!%p217_p3)  ;;  %v314_v5 = vld [vmem:[%s785_s3] sm:$0xff] (!%p217_p3)  ;;  %v315_v16 = vld [vmem:[%s785_s3 + $0x8] sm:$0xff] (!%p217_p3)  ;;  %vm360_vm1 = vcmask (!%p217_p3), 1043456   ;;  %v545_v44 = vcombine.low (!%p217_p3), %v689_v2, %v689_v2  ;;  %vm436_vm2 = vcmask (!%p217_p3), 408576  }
   0x8   : > { %s694_s29 = scalar_lea.vmem (!%p217_p3), %s782_s0, %s277_s22  ;;  %599 = vset.pattern.permute.xlu1 (!%p217_p3), %v629_v0  ;;  %598 = vset.pattern.permute.xlu0 (!%p217_p3), %v629_v0  ;;  %v412_v11 = vld [vmem:[%s786_s4] sm:$0xff] (!%p217_p3)  ;;  %v414_v17 = vld [vmem:[%s786_s4 + $0x10] sm:$0xff] (!%p217_p3)  ;;  %v413_v20 = vld [vmem:[%s786_s4 + $0x8] sm:$0xff] (!%p217_p3)  ;;  %s258_s23 = smul.u32 (!%p217_p3), 3, %s619_s18 }
   0x9   : > { %v279_v6 = vld [vmem:[%s694_s29] sm:$0xff] (!%p217_p3)  ;;  %v280_v7 = vld [vmem:[%s694_s29 + $0x8] sm:$0xff] (!%p217_p3)  ;;  %v281_v8 = vld [vmem:[%s694_s29 + $0x10] sm:$0xff] (!%p217_p3)  ;;  %547 = vmatprep.mubr.msk.bf16.mxu0 (!%p217_p3), %vm353_vm0, %v602_v1  ;;  %332 = vperm.xlu1 (!%p217_p3), %599, %v316_v4  }
   0xa   : > { %v300_v9 = vpack.c.bf16 (!%p217_p3), %v280_v7, %v279_v6  ;;  %v282_v10 = vld [vmem:[%s694_s29 + $0x18] sm:$0xff] (!%p217_p3)  ;;  %548 = vmatprep.mubr.msk.bf16.mxu1 (!%p217_p3), %vm353_vm0, %v546_v3  ;;  %322 = vperm.xlu0 (!%p217_p3), %598, %v314_v5   ;;  %v283_v13 = vld [vmem:[%s694_s29 + $0x20] sm:$0xff] (!%p217_p3)  ;;  %v284_v14 = vld [vmem:[%s694_s29 + $0x28] sm:$0xff] (!%p217_p3)  ;;  %p259_p4 = scmp.lt.s32.totalorder (!%p217_p3), %s258_s23, 14 }
   0xb   : > { %v301_v12 = vpack.c.bf16 (!%p217_p3), %v282_v10, %v281_v8  ;;  %v302_v15 = vpack.c.bf16 (!%p217_p3), %v284_v14, %v283_v13  ;;  %v285_v18 = vld [vmem:[%s694_s29 + $0x30] sm:$0xff] (!%p217_p3)  ;;  %v286_v19 = vld [vmem:[%s694_s29 + $0x38] sm:$0xff] (!%p217_p3)  ;;  %v287_v22 = vld [vmem:[%s694_s29 + $0x40] sm:$0xff] (!%p217_p3) }
   0xc   : > { %365 = vmatpush1.bf16.msra.mxu0 (!%p217_p3), %v300_v9  ;;  %562 = vmatpush1.bf16.msra.mxu1 (!%p217_p3), %v300_v9  ;;  %v303_v21 = vpack.c.bf16 (!%p217_p3), %v286_v19, %v285_v18  ;;  %v288_v23 = vld [vmem:[%s694_s29 + $0x48] sm:$0xff] (!%p217_p3)  ;;  %v289_v25 = vld [vmem:[%s694_s29 + $0x50] sm:$0xff] (!%p217_p3)  ;;  %v290_v26 = vld [vmem:[%s694_s29 + $0x58] sm:$0xff] (!%p217_p3) }
   0xd   : > { %366 = vmatprep.subr.bf16.mxu0 (!%p217_p3), %v629_v0  ;;  %552 = vmatprep.subr.bf16.mxu1 (!%p217_p3), %v629_v0  ;;  %v304_v24 = vpack.c.bf16 (!%p217_p3), %v288_v23, %v287_v22  ;;  %v305_v27 = vpack.c.bf16 (!%p217_p3), %v290_v26, %v289_v25  ;;  %v291_v28 = vld [vmem:[%s694_s29 + $0x60] sm:$0xff] (!%p217_p3)  ;;  %v292_v29 = vld [vmem:[%s694_s29 + $0x68] sm:$0xff] (!%p217_p3)  ;;  %v293_v31 = vld [vmem:[%s694_s29 + $0x70] sm:$0xff] (!%p217_p3) }
   0xe   : > { %417 = vperm.xlu1 %599, %v412_v11   ;;  %327 = vperm.xlu0 %598, %v315_v16   ;;  %v306_v30 = vpack.c.bf16 %v292_v29, %v291_v28  ;;  %v294_v32 = vld [vmem:[%s694_s29 + $0x78] sm:$0xff]  ;;  %v295_v34 = vld [vmem:[%s694_s29 + $0x80] sm:$0xff]  ;;  %v296_v35 = vld [vmem:[%s694_s29 + $0x88] sm:$0xff]  ;;  %s793_s23 = smov (!%p259_p4, %s258_s23), 14 }
   0xf   : > { %v307_v33 = vpack.c.bf16 %v294_v32, %v293_v31  ;;  %v308_v36 = vpack.c.bf16 %v296_v35, %v295_v34  ;;  %v297_v37 = vld [vmem:[%s694_s29 + $0x90] sm:$0xff]  ;;  %v298_v38 = vld [vmem:[%s694_s29 + $0x98] sm:$0xff]  ;;  %v299_v39 = vld [vmem:[%s694_s29 + $0xa0] sm:$0xff]  ;;  %s541_s24 = sshll.u32 %s793_s23, 3 }
  0x10   : > { %367 = vmatpush1.bf16.msra.mxu0 %v301_v12  ;;  %563 = vmatpush1.bf16.msra.mxu1 %v301_v12  ;;  %v309_v40 = vpack.c.bf16 %v298_v38, %v297_v37  ;;  %v310_v41 = vpack.c.bf16 %v299_v39, %v299_v39  ;;  %v600_v43 = vld [vmem:[%s783_s1] ss:$8 sps:$4 sm:$0xff]   ;;  %s265_s27 = scalar_lea.vmem %s784_s2, %s541_s24  ;;  %s274_s29 = scalar_lea.vmem %s787_s5, %s541_s24 }
  0x11   : > { %368 = vmatprep.subr.bf16.mxu0 %v629_v0  ;;  %553 = vmatprep.subr.bf16.mxu1 %v629_v0  ;;  %v319_v48 = vld [vmem:[%s265_s27 + $0x10] sm:$0xff]  ;;  %v317_v49 = vld [vmem:[%s265_s27] sm:$0xff]  ;;  %v318_v51 = vld [vmem:[%s265_s27 + $0x8] sm:$0xff] }
  0x12   : > { %427 = vperm.xlu1 %599, %v414_v17   ;;  %422 = vperm.xlu0 %598, %v413_v20   ;;  %v362_v42 = vsel %vm360_vm1, %v310_v41, 0 }
  0x14   : > { %369 = vmatpush1.bf16.msra.mxu0 %v302_v15  ;;  %564 = vmatpush1.bf16.msra.mxu1 %v302_v15 }
  0x15   : > { %370 = vmatprep.subr.bf16.mxu0 %v629_v0  ;;  %554 = vmatprep.subr.bf16.mxu1 %v629_v0 }
  0x18   : > { %371 = vmatpush1.bf16.msra.mxu0 %v303_v21  ;;  %565 = vmatpush1.bf16.msra.mxu1 %v303_v21 }
  0x19   : > { %372 = vmatprep.subr.bf16.mxu0 %v629_v0  ;;  %555 = vmatprep.subr.bf16.mxu1 %v629_v0 }
  0x1c   : > { %373 = vmatpush1.bf16.msra.mxu0 %v304_v24  ;;  %566 = vmatpush1.bf16.msra.mxu1 %v304_v24 }
  0x1d   : > { %374 = vmatprep.subr.bf16.mxu0 %v629_v0  ;;  %556 = vmatprep.subr.bf16.mxu1 %v629_v0 }
  0x20   : > { %375 = vmatpush1.bf16.msra.mxu0 %v305_v27  ;;  %567 = vmatpush1.bf16.msra.mxu1 %v305_v27 }
  0x21   : > { %376 = vmatprep.subr.bf16.mxu0 %v629_v0  ;;  %557 = vmatprep.subr.bf16.mxu1 %v629_v0 }
  0x24   : > { %377 = vmatpush1.bf16.msra.mxu0 %v306_v30  ;;  %568 = vmatpush1.bf16.msra.mxu1 %v306_v30 }
  0x25   : > { %378 = vmatprep.subr.bf16.mxu0 %v629_v0  ;;  %558 = vmatprep.subr.bf16.mxu1 %v629_v0 }
  0x28   : > { %379 = vmatpush1.bf16.msra.mxu0 %v307_v33  ;;  %569 = vmatpush1.bf16.msra.mxu1 %v307_v33 }
  0x29   : > { %380 = vmatprep.subr.bf16.mxu0 %v629_v0  ;;  %559 = vmatprep.subr.bf16.mxu1 %v629_v0 }
  0x2c   : > { %381 = vmatpush1.bf16.msra.mxu0 %v308_v36  ;;  %570 = vmatpush1.bf16.msra.mxu1 %v308_v36 }
  0x2d   : > { %382 = vmatprep.subr.bf16.mxu0 %v629_v0  ;;  %560 = vmatprep.subr.bf16.mxu1 %v629_v0 }
  0x30   : > { %383 = vmatpush1.bf16.msra.mxu0 %v309_v40  ;;  %571 = vmatpush1.bf16.msra.mxu1 %v309_v40 }
  0x31   : > { %384 = vmatprep.subr.bf16.mxu0 %v629_v0  ;;  %561 = vmatprep.subr.bf16.mxu1 %v629_v0 }
  0x34   : > { %385 = vmatpush1.bf16.msra.mxu0 %v362_v42  ;;  %572 = vmatpush1.bf16.msra.mxu1 %v362_v42 }
  0x37   : > { %397 = vmatmul.mubr.bf16.vlgmr.msra.gmra.mrb[0].mxu0 %v600_v43  ;;  %405 = vmatmul.mubr.bf16.vlgmr.msra.gmra.mrb[0].mxu1 %v545_v44 }
  0x88   : > { %v333_v45 = vpop.permute.xlu1 %332 }
  0x89   : > { %v323_v46 = vpop.permute.xlu0 %322  ;;  %v337_v52 = vmul.f32 %v333_v45, %v319_v48 }
  0x8a   : > { %v335_v53 = vmul.f32 %v323_v46, %v317_v49 }
  0x8d   : > { %v418_v47 = vpop.permute.xlu1 %417  ;;  %v328_v50 = vpop.permute.xlu0 %327 }
  0x8e   : > { %v336_v57 = vmul.f32 %v328_v50, %v318_v51 }
  0x91   : > { %v428_v54 = vpop.permute.xlu1 %427  ;;  %v423_v5 = vpop.permute.xlu0 %422 }
 0x10a   : > { %v398_v55 = vpop.f32.mrb[0].mxu0  ;;  %v406_v56 = vpop.f32.mrb[0].mxu1 }
 0x10b   : > { %v399_v58 = vadd.f32 %v398_v55, %v335_v53  ;;  %v407_v59 = vadd.f32 %v406_v56, %v337_v52  ;;  %v400_v60 = vpop.f32.mrb[1].mxu0  ;;  %v408_v61 = vpop.f32.mrb[1].mxu1 }
 0x10c   : > { %v401_v62 = vpop.f32.mrb[2].mxu0  ;;  %v409_v63 = vpop.f32.mrb[2].mxu1 }
 0x10d   : > { %v430_v0 = vadd.f32 %v418_v47, %v399_v58  ;;  %v432_v1 = vadd.f32 %v428_v54, %v407_v59  ;;  %v402_v2 = vadd.f32 %v401_v62, %v336_v57  ;;  %v403_v3 = vpop.f32.mrb[3].mxu0  ;;  %v410_v4 = vpop.f32.mrb[3].mxu1 }
 0x10f   : > { %v433_v6 = vmax.f32 %v430_v0, 0.0  ;;  %v435_v7 = vmax.f32 %v432_v1, 0.0  ;;  %v431_v8 = vadd.f32 %v423_v5, %v402_v2 }
 0x111   : > { %437 = vst.msk [vmem:[%s274_s29] sm:$0xff] %vm436_vm2, %v433_v6  ;;  %439 = vst.msk [vmem:[%s274_s29 + $0x10] sm:$0xff] %vm436_vm2, %v435_v7  ;;  %v434_v9 = vmax.f32 %v431_v8, 0.0 }
 0x113   : > { %438 = vst.msk [vmem:[%s274_s29 + $0x8] sm:$0xff] %vm436_vm2, %v434_v9 }
 0x114 PF: > { %s15_s20 = sadd.s32 1, %s627_s20   ;;  %s788_s18 = smov %s623_s19 }
 0x115   : > { %p12_p5 = scmp.ge.s32.totalorder %s15_s20, 7   ;;  %s789_s19 = smov %s791_s21 }
 0x117   :  { %14 = sbr.rel (!%p12_p5) target bundleno = 2 (0x2), region = 74 }

// kernel: dcrn_forward.15
= control target key start
LH: loop header
LB: loop body
LE: loop exit
PB: predicated region body
PF: predicated region fallthrough
CT: control target
= control target key end

     0   :  { %v186_v0 = vmov 0   ;;  %vm108_vm0 = vcmask 195584   ;;  %vm112_vm1 = vcmask 1043456   ;;  %vm156_vm2 = vcmask 11264   ;;  %s246_s0 = inlined_call_operand.vmem [shape: bf16[152,2], index: 0, kind: input, shape index: {}]   ;;  %s247_s2 = inlined_call_operand.vmem [shape: f32[4,1], index: 2, kind: input, shape index: {}]   ;;  %s248_s1 = inlined_call_operand.vmem [shape: bf16[4,152], index: 1, kind: input, shape index: {}]   ;;  %s249_s3 = inlined_call_operand.vmem [shape: f32[4,2], index: 3, kind: output, shape index: {}]  }
   0x1   :  { %116 = vmatprep.subr.bf16.mxu0 %v186_v0  ;;  %v176_v1 = vld [vmem:[%s246_s0] sm:$0xff]   ;;  %175 = vset.pattern.permute.xlu0 %v186_v0  ;;  %v177_v2 = vld [vmem:[%s246_s0 + $0x8] sm:$0xff]   ;;  %v178_v3 = vld [vmem:[%s246_s0 + $0x10] sm:$0xff]  }
   0x2   :  { %117 = vmatpush1.bf16.msra.mxu0 %v176_v1  ;;  %v35_v4 = vld [vmem:[%s247_s2] sm:$0xf]  ;;  %v179_v5 = vld [vmem:[%s246_s0 + $0x18] sm:$0xff]   ;;  %v181_v9 = vld [vmem:[%s246_s0 + $0x28] sm:$0xff]  }
   0x3   :  { %118 = vmatprep.subr.bf16.mxu0 %v186_v0  ;;  %v162_v6 = vld.sshfl [vmem:[%s248_s1] sm:$0x33 pattern:$0x76325410]  ;;  %38 = vperm.xlu0 %175, %v35_v4   ;;  %v182_v10 = vld [vmem:[%s246_s0 + $0x30] sm:$0xff]   ;;  %v183_v11 = vld [vmem:[%s246_s0 + $0x38] sm:$0xff]  }
   0x4   :  { %v49_v7 = vcombine.high %v162_v6, %v162_v6  ;;  %v180_v8 = vld [vmem:[%s246_s0 + $0x20] sm:$0xff]   ;;  %v185_v13 = vld [vmem:[%s246_s0 + $0x48] ss:$0 sps:$4 sm:$0xff]  }
   0x5   :  { %v184_v12 = vld [vmem:[%s246_s0 + $0x40] sm:$0xff]   ;;  %v114_v14 = vsel %vm112_vm1, %v185_v13, 0 }
   0x6   :  { %119 = vmatpush1.bf16.msra.mxu0 %v177_v2  ;;  %173 = vmatprep.mubr.msk.bf16.mxu0 %vm108_vm0, %v49_v7 }
   0x7   :  { %120 = vmatprep.subr.bf16.mxu0 %v186_v0 }
   0xa   :  { %121 = vmatpush1.bf16.msra.mxu0 %v178_v3 }
   0xb   :  { %122 = vmatprep.subr.bf16.mxu0 %v186_v0 }
   0xe   :  { %123 = vmatpush1.bf16.msra.mxu0 %v179_v5 }
   0xf   :  { %124 = vmatprep.subr.bf16.mxu0 %v186_v0 }
  0x12   :  { %125 = vmatpush1.bf16.msra.mxu0 %v180_v8 }
  0x13   :  { %126 = vmatprep.subr.bf16.mxu0 %v186_v0 }
  0x16   :  { %127 = vmatpush1.bf16.msra.mxu0 %v181_v9 }
  0x17   :  { %128 = vmatprep.subr.bf16.mxu0 %v186_v0 }
  0x1a   :  { %129 = vmatpush1.bf16.msra.mxu0 %v182_v10 }
  0x1b   :  { %130 = vmatprep.subr.bf16.mxu0 %v186_v0 }
  0x1e   :  { %131 = vmatpush1.bf16.msra.mxu0 %v183_v11 }
  0x1f   :  { %132 = vmatprep.subr.bf16.mxu0 %v186_v0 }
  0x22   :  { %133 = vmatpush1.bf16.msra.mxu0 %v184_v12 }
  0x23   :  { %134 = vmatprep.subr.bf16.mxu0 %v186_v0 }
  0x26   :  { %135 = vmatpush1.bf16.msra.mxu0 %v114_v14 }
  0x29   :  { %149 = vmatmul.mubr.bf16.vlgmr.msra.gmra.mrb[0].mxu0 %v162_v6 }
  0x82   :  { %v39_v15 = vpop.permute.xlu0 %38 }
  0xfc   :  { %v150_v16 = vpop.f32.mrb[0].mxu0 }
  0xfd   :  { %v151_v17 = vadd.f32 %v150_v16, %v39_v15  ;;  %v152_v18 = vpop.f32.mrb[1].mxu0 }
  0xfe   :  { %v153_v19 = vpop.f32.mrb[2].mxu0 }
  0xff   :  { %157 = vst.msk [vmem:[%s249_s3] sm:$0xf] %vm156_vm2, %v151_v17  ;;  %v154_v20 = vpop.f32.mrb[3].mxu0 }

</bundles_post_ra>
